<compile_context>
chip_gen: v7x
topology: tpu7x:2x2x1
jax: 0.10.0
libtpu: 0.0.40
codegen_flags: <defaults>
</compile_context>

<pallas_src>
import functools

import jax
import jax.numpy as jnp
from jax.experimental import pallas as pl
from jax.experimental.pallas import tpu as pltpu


def _mha_kernel(q_ref, k_ref, v_ref,
                wq_ref, bq_ref, wk_ref, bk_ref, wv_ref, bv_ref,
                wo_ref, bo_ref,
                out_ref, concat_ref,
                *, bb, sq, sk, num_heads, dim_q, dim_k):
    """Fused multi-head attention for one block of `bb` batch elements."""
    # Cast activations to bf16 on-chip (fast MXU path); accumulate in f32.
    q_in = q_ref[...].astype(jnp.bfloat16)   # (bb*Sq, dim_in)
    k_in = k_ref[...].astype(jnp.bfloat16)   # (bb*Sk, dim_in)
    v_in = v_ref[...].astype(jnp.bfloat16)   # (bb*Sk, dim_in)

    # Fused projections: ONE matmul each over all bb*S rows.
    # The 1/sqrt(dim_q) attention scale is pre-folded into wq/bq.
    q_all = (jnp.dot(q_in, wq_ref[...], preferred_element_type=jnp.float32)
             + bq_ref[...]).astype(jnp.bfloat16)          # (bb*Sq, H*dim_q)
    k_all = (jnp.dot(k_in, wk_ref[...], preferred_element_type=jnp.float32)
             + bk_ref[...]).astype(jnp.bfloat16)          # (bb*Sk, H*dim_k)
    v_all = (jnp.dot(v_in, wv_ref[...], preferred_element_type=jnp.float32)
             + bv_ref[...]).astype(jnp.bfloat16)          # (bb*Sk, H*dim_k)

    # Attention core: static unrolled loops over batch elements and heads.
    # Each head's normalized output is written straight into the concat
    # scratch (bounds live ranges; no lane-axis concatenate).
    for b in range(bb):
        q_b = q_all[b * sq:(b + 1) * sq, :]
        k_b = k_all[b * sk:(b + 1) * sk, :]
        v_b = v_all[b * sk:(b + 1) * sk, :]
        for h in range(num_heads):
            qh = q_b[:, h * dim_q:(h + 1) * dim_q]        # (Sq, dim_q)
            kh = k_b[:, h * dim_k:(h + 1) * dim_k]        # (Sk, dim_k)
            vh = v_b[:, h * dim_k:(h + 1) * dim_k]        # (Sk, dim_k)

            # scores = q @ k^T, contracting last dims (no transpose needed).
            scores = jax.lax.dot_general(
                qh, kh, (((1,), (1,)), ((), ())),
                preferred_element_type=jnp.float32)       # (Sq, Sk)

            m = jnp.max(scores, axis=-1, keepdims=True)
            p = jnp.exp(scores - m)
            l = jnp.sum(p, axis=-1, keepdims=True)
            pv = jnp.dot(p.astype(jnp.bfloat16), vh,
                         preferred_element_type=jnp.float32)   # (Sq, dim_k)
            # Normalize after the PV matmul; reciprocal goes to the EUP slot.
            pv = pv * pl.reciprocal(l, approx=True)
            concat_ref[b * sq:(b + 1) * sq,
                       h * dim_k:(h + 1) * dim_k] = pv.astype(jnp.bfloat16)

    # Output projection over all bb*Sq rows at once; lane-dense bf16 store.
    out = (jnp.dot(concat_ref[...], wo_ref[...],
                   preferred_element_type=jnp.float32) + bo_ref[...])
    out_ref[...] = out.astype(out_ref.dtype)              # (bb*Sq, dim_pad)


def _pick_block_batch(batch, seq_q, target_rows=512):
    """Largest divisor of `batch` keeping bb*Sq around the MXU sweet spot."""
    best = 1
    for cand in range(1, batch + 1):
        if batch % cand != 0:
            continue
        if cand * seq_q <= target_rows or best * seq_q < 128:
            best = cand
    return best


def multi_head_attention(query, key, value, params):
    """query: (B, Sq, dim_in); key/value: (B, Sk, dim_in).

    Returns (B, Sq, dim_in) in bfloat16 (bf16 MXU path + bf16 output store).
    """
    wq, bq, wk, bk, wv, bv, wo, bo = params
    B, Sq, dim_in = query.shape
    _, Sk, _ = key.shape
    H, _, dim_q = wq.shape
    dim_k = wk.shape[2]

    LANES = 128
    dim_pad = ((dim_in + LANES - 1) // LANES) * LANES   # lane-dense output width
    scale = 1.0 / (float(dim_q) ** 0.5)

    # Fuse heads along the output-feature axis (trace-time, tiny).
    wq_f = (jnp.transpose(wq, (1, 0, 2)).reshape(dim_in, H * dim_q)
            * scale).astype(jnp.bfloat16)
    bq_f = (bq.reshape(1, H * dim_q) * scale).astype(jnp.float32)
    wk_f = jnp.transpose(wk, (1, 0, 2)).reshape(dim_in, H * dim_k).astype(jnp.bfloat16)
    bk_f = bk.reshape(1, H * dim_k).astype(jnp.float32)
    wv_f = jnp.transpose(wv, (1, 0, 2)).reshape(dim_in, H * dim_k).astype(jnp.bfloat16)
    bv_f = bv.reshape(1, H * dim_k).astype(jnp.float32)

    # Output projection, zero-padded so the kernel writes a 128-multiple last dim.
    wo_f = jnp.pad(wo.reshape(H * dim_k, dim_in),
                   ((0, 0), (0, dim_pad - dim_in))).astype(jnp.bfloat16)
    bo_f = jnp.pad(bo.reshape(1, dim_in),
                   ((0, 0), (0, dim_pad - dim_in))).astype(jnp.float32)

    # Flat row-major views (free reshapes) so each grid step feeds Bb*S rows
    # into the MXU.  No wrapper-side dtype cast (cast happens on-chip).
    Bb = _pick_block_batch(B, Sq)
    q2 = query.reshape(B * Sq, dim_in)
    k2 = key.reshape(B * Sk, dim_in)
    v2 = value.reshape(B * Sk, dim_in)

    kernel = functools.partial(_mha_kernel, bb=Bb, sq=Sq, sk=Sk,
                               num_heads=H, dim_q=dim_q, dim_k=dim_k)

    out2 = pl.pallas_call(
        kernel,
        out_shape=jax.ShapeDtypeStruct((B * Sq, dim_pad), jnp.bfloat16),
        grid_spec=pltpu.PrefetchScalarGridSpec(
            num_scalar_prefetch=0,
            grid=(B // Bb,),
            in_specs=[
                pl.BlockSpec((Bb * Sq, dim_in), lambda i: (i, 0)),     # query rows
                pl.BlockSpec((Bb * Sk, dim_in), lambda i: (i, 0)),     # key rows
                pl.BlockSpec((Bb * Sk, dim_in), lambda i: (i, 0)),     # value rows
                # Weights/biases: full-array blocks, constant index -> DMA'd once,
                # stay resident in VMEM across batch steps.
                pl.BlockSpec((dim_in, H * dim_q), lambda i: (0, 0)),   # Wq (fused)
                pl.BlockSpec((1, H * dim_q), lambda i: (0, 0)),        # bq
                pl.BlockSpec((dim_in, H * dim_k), lambda i: (0, 0)),   # Wk
                pl.BlockSpec((1, H * dim_k), lambda i: (0, 0)),        # bk
                pl.BlockSpec((dim_in, H * dim_k), lambda i: (0, 0)),   # Wv
                pl.BlockSpec((1, H * dim_k), lambda i: (0, 0)),        # bv
                pl.BlockSpec((H * dim_k, dim_pad), lambda i: (0, 0)),  # Wo (padded)
                pl.BlockSpec((1, dim_pad), lambda i: (0, 0)),          # bo (padded)
            ],
            out_specs=pl.BlockSpec((Bb * Sq, dim_pad), lambda i: (i, 0)),
            scratch_shapes=[
                # Head-output assembly buffer (replaces jnp.concatenate).
                pltpu.VMEM((Bb * Sq, H * dim_k), jnp.bfloat16),
            ],
        ),
        compiler_params=pltpu.CompilerParams(
            dimension_semantics=("parallel",),
        ),
    )(q2, k2, v2, wq_f, bq_f, wk_f, bk_f, wv_f, bv_f, wo_f, bo_f)

    return out2[:, :dim_in].reshape(B, Sq, dim_in)


def init_params(key, num_heads, dim_in, dim_q, dim_k):
    """Deterministic synthetic parameters (already in x @ W orientation)."""
    ks = jax.random.split(key, 8)
    s = 0.1
    wq = s * jax.random.normal(ks[0], (num_heads, dim_in, dim_q), jnp.float32)
    bq = s * jax.random.normal(ks[1], (num_heads, 1, dim_q), jnp.float32)
    wk = s * jax.random.normal(ks[2], (num_heads, dim_in, dim_k), jnp.float32)
    bk = s * jax.random.normal(ks[3], (num_heads, 1, dim_k), jnp.float32)
    wv = s * jax.random.normal(ks[4], (num_heads, dim_in, dim_k), jnp.float32)
    bv = s * jax.random.normal(ks[5], (num_heads, 1, dim_k), jnp.float32)
    # Output linear: y = concat_heads @ Wo + bo, Wo stored per-head (H, dim_k, dim_in).
    wo = s * jax.random.normal(ks[6], (num_heads, dim_k, dim_in), jnp.float32)
    bo = s * jax.random.normal(ks[7], (1, dim_in), jnp.float32)
    return wq, bq, wk, bk, wv, bv, wo, bo


def reference_mha(query, key, value, params):
    """Pure-JAX f32 reference matching the PyTorch module semantics."""
    wq, bq, wk, bk, wv, bv, wo, bo = params
    H = wq.shape[0]
    head_outs = []
    for h in range(H):
        q = query @ wq[h] + bq[h]          # (B, Sq, dim_q)
        k = key @ wk[h] + bk[h]            # (B, Sk, dim_k)
        v = value @ wv[h] + bv[h]          # (B, Sk, dim_k)
        scores = jnp.einsum("bqd,bkd->bqk", q, k) / jnp.sqrt(q.shape[-1] * 1.0)
        probs = jax.nn.softmax(scores, axis=-1)
        head_outs.append(jnp.einsum("bqk,bkd->bqd", probs, v))
    concat = jnp.concatenate(head_outs, axis=-1)                 # (B, Sq, H*dim_k)
    wo_full = wo.reshape(H * wo.shape[1], wo.shape[2])           # (H*dim_k, dim_in)
    return concat @ wo_full + bo[0]


if __name__ == "__main__":
    num_heads, dim_in, dim_q, dim_k = 4, 32, 16, 16
    B, Sq, Sk = 2, 8, 8

    root = jax.random.PRNGKey(0)
    kp, kq, kk, kv = jax.random.split(root, 4)
    params = init_params(kp, num_heads, dim_in, dim_q, dim_k)

    query = jax.random.normal(kq, (B, Sq, dim_in), jnp.float32)
    key = jax.random.normal(kk, (B, Sk, dim_in), jnp.float32)
    value = jax.random.normal(kv, (B, Sk, dim_in), jnp.float32)

    out = multi_head_attention(query, key, value, params)
    out = jax.block_until_ready(out)

    ref = reference_mha(query, key, value, params)
    assert out.shape == (B, Sq, dim_in)
    # bf16 MXU operands + bf16 output store + approx reciprocal -> looser
    # tolerance than pure f32.
    err = jnp.max(jnp.abs(out.astype(jnp.float32) - ref))
    assert jnp.allclose(out.astype(jnp.float32), ref, atol=3e-2, rtol=3e-2), (
        f"max abs err {err}")

    print("KERNEL_OK")
</pallas_src>

<mosaic_0001>
module attributes {stable_mosaic.version = 11 : i64} {
  func.func @_mha_kernel(%arg0: i32, %arg1: memref<16x32xf32, #tpu.memory_space<vmem>>, %arg2: memref<16x32xf32, #tpu.memory_space<vmem>>, %arg3: memref<16x32xf32, #tpu.memory_space<vmem>>, %arg4: memref<32x64xbf16, #tpu.memory_space<vmem>>, %arg5: memref<1x64xf32, #tpu.memory_space<vmem>>, %arg6: memref<32x64xbf16, #tpu.memory_space<vmem>>, %arg7: memref<1x64xf32, #tpu.memory_space<vmem>>, %arg8: memref<32x64xbf16, #tpu.memory_space<vmem>>, %arg9: memref<1x64xf32, #tpu.memory_space<vmem>>, %arg10: memref<64x128xbf16, #tpu.memory_space<vmem>>, %arg11: memref<1x128xf32, #tpu.memory_space<vmem>>, %arg12: memref<16x128xbf16, #tpu.memory_space<vmem>>, %arg13: memref<16x64xbf16, #tpu.memory_space<vmem>>) attributes {dimension_semantics = [#tpu.dimension_semantics<parallel>], iteration_bounds = array<i64: 1>, scalar_prefetch = 0 : i64, scratch_operands = 1 : i64, tpu.core_type = #tpu.core_type<tc>, window_params = [{transform_indices = @transform_0, window_bounds = array<i64: 16, 32>}, {transform_indices = @transform_1, window_bounds = array<i64: 16, 32>}, {transform_indices = @transform_2, window_bounds = array<i64: 16, 32>}, {pipeline_mode = #tpu.pipeline_mode<synchronous>, transform_indices = @transform_3, window_bounds = array<i64: 32, 64>}, {pipeline_mode = #tpu.pipeline_mode<synchronous>, transform_indices = @transform_4, window_bounds = array<i64: 1, 64>}, {pipeline_mode = #tpu.pipeline_mode<synchronous>, transform_indices = @transform_5, window_bounds = array<i64: 32, 64>}, {pipeline_mode = #tpu.pipeline_mode<synchronous>, transform_indices = @transform_6, window_bounds = array<i64: 1, 64>}, {pipeline_mode = #tpu.pipeline_mode<synchronous>, transform_indices = @transform_7, window_bounds = array<i64: 32, 64>}, {pipeline_mode = #tpu.pipeline_mode<synchronous>, transform_indices = @transform_8, window_bounds = array<i64: 1, 64>}, {pipeline_mode = #tpu.pipeline_mode<synchronous>, transform_indices = @transform_9, window_bounds = array<i64: 64, 128>}, {pipeline_mode = #tpu.pipeline_mode<synchronous>, transform_indices = @transform_10, window_bounds = array<i64: 1, 128>}, {transform_indices = @transform_11, window_bounds = array<i64: 16, 128>}]} {
    %c0 = arith.constant 0 : index
    %c0_0 = arith.constant 0 : index
    %0 = vector.load %arg1[%c0, %c0_0] : memref<16x32xf32, #tpu.memory_space<vmem>>, vector<16x32xf32>
    %1 = arith.truncf %0 : vector<16x32xf32> to vector<16x32xbf16>
    %c0_1 = arith.constant 0 : index
    %c0_2 = arith.constant 0 : index
    %2 = vector.load %arg2[%c0_1, %c0_2] : memref<16x32xf32, #tpu.memory_space<vmem>>, vector<16x32xf32>
    %3 = arith.truncf %2 : vector<16x32xf32> to vector<16x32xbf16>
    %c0_3 = arith.constant 0 : index
    %c0_4 = arith.constant 0 : index
    %4 = vector.load %arg3[%c0_3, %c0_4] : memref<16x32xf32, #tpu.memory_space<vmem>>, vector<16x32xf32>
    %5 = arith.truncf %4 : vector<16x32xf32> to vector<16x32xbf16>
    %c0_5 = arith.constant 0 : index
    %c0_6 = arith.constant 0 : index
    %6 = vector.load %arg4[%c0_5, %c0_6] : memref<32x64xbf16, #tpu.memory_space<vmem>>, vector<32x64xbf16>
    %cst = arith.constant dense<0.000000e+00> : vector<16x64xf32>
    %7 = tpu.matmul %1, %6, %cst {dimension_numbers = #tpu.dot_dimension_numbers<[1], [0], [0], [1], [0, 0, 1, 1], [], []>} : vector<16x32xbf16>, vector<32x64xbf16>, vector<16x64xf32> -> vector<16x64xf32>
    %c0_7 = arith.constant 0 : index
    %c0_8 = arith.constant 0 : index
    %8 = vector.load %arg5[%c0_7, %c0_8] : memref<1x64xf32, #tpu.memory_space<vmem>>, vector<1x64xf32>
    %9 = vector.broadcast %8 : vector<1x64xf32> to vector<16x64xf32>
    %10 = arith.addf %7, %9 : vector<16x64xf32>
    %11 = arith.truncf %10 : vector<16x64xf32> to vector<16x64xbf16>
    %c0_9 = arith.constant 0 : index
    %c0_10 = arith.constant 0 : index
    %12 = vector.load %arg6[%c0_9, %c0_10] : memref<32x64xbf16, #tpu.memory_space<vmem>>, vector<32x64xbf16>
    %cst_11 = arith.constant dense<0.000000e+00> : vector<16x64xf32>
    %13 = tpu.matmul %3, %12, %cst_11 {dimension_numbers = #tpu.dot_dimension_numbers<[1], [0], [0], [1], [0, 0, 1, 1], [], []>} : vector<16x32xbf16>, vector<32x64xbf16>, vector<16x64xf32> -> vector<16x64xf32>
    %c0_12 = arith.constant 0 : index
    %c0_13 = arith.constant 0 : index
    %14 = vector.load %arg7[%c0_12, %c0_13] : memref<1x64xf32, #tpu.memory_space<vmem>>, vector<1x64xf32>
    %15 = vector.broadcast %14 : vector<1x64xf32> to vector<16x64xf32>
    %16 = arith.addf %13, %15 : vector<16x64xf32>
    %17 = arith.truncf %16 : vector<16x64xf32> to vector<16x64xbf16>
    %c0_14 = arith.constant 0 : index
    %c0_15 = arith.constant 0 : index
    %18 = vector.load %arg8[%c0_14, %c0_15] : memref<32x64xbf16, #tpu.memory_space<vmem>>, vector<32x64xbf16>
    %cst_16 = arith.constant dense<0.000000e+00> : vector<16x64xf32>
    %19 = tpu.matmul %5, %18, %cst_16 {dimension_numbers = #tpu.dot_dimension_numbers<[1], [0], [0], [1], [0, 0, 1, 1], [], []>} : vector<16x32xbf16>, vector<32x64xbf16>, vector<16x64xf32> -> vector<16x64xf32>
    %c0_17 = arith.constant 0 : index
    %c0_18 = arith.constant 0 : index
    %20 = vector.load %arg9[%c0_17, %c0_18] : memref<1x64xf32, #tpu.memory_space<vmem>>, vector<1x64xf32>
    %21 = vector.broadcast %20 : vector<1x64xf32> to vector<16x64xf32>
    %22 = arith.addf %19, %21 : vector<16x64xf32>
    %23 = arith.truncf %22 : vector<16x64xf32> to vector<16x64xbf16>
    %24 = vector.extract_strided_slice %11 {offsets = [0, 0], sizes = [8, 64], strides = [1, 1]} : vector<16x64xbf16> to vector<8x64xbf16>
    %25 = vector.extract_strided_slice %17 {offsets = [0, 0], sizes = [8, 64], strides = [1, 1]} : vector<16x64xbf16> to vector<8x64xbf16>
    %26 = vector.extract_strided_slice %23 {offsets = [0, 0], sizes = [8, 64], strides = [1, 1]} : vector<16x64xbf16> to vector<8x64xbf16>
    %27 = vector.extract_strided_slice %24 {offsets = [0, 0], sizes = [8, 16], strides = [1, 1]} : vector<8x64xbf16> to vector<8x16xbf16>
    %28 = vector.extract_strided_slice %25 {offsets = [0, 0], sizes = [8, 16], strides = [1, 1]} : vector<8x64xbf16> to vector<8x16xbf16>
    %29 = vector.extract_strided_slice %26 {offsets = [0, 0], sizes = [8, 16], strides = [1, 1]} : vector<8x64xbf16> to vector<8x16xbf16>
    %cst_19 = arith.constant dense<0.000000e+00> : vector<8x8xf32>
    %30 = tpu.matmul %27, %28, %cst_19 {dimension_numbers = #tpu.dot_dimension_numbers<[1], [1], [0], [0], [0, 0, 1, 0], [], []>} : vector<8x16xbf16>, vector<8x16xbf16>, vector<8x8xf32> -> vector<8x8xf32>
    %cst_20 = arith.constant dense<0xFF800000> : vector<8xf32>
    %31 = vector.multi_reduction <maximumf>, %30, %cst_20 [1] : vector<8x8xf32> to vector<8xf32>
    %32 = vector.shape_cast %31 : vector<8xf32> to vector<8x1xf32>
    %33 = vector.broadcast %32 : vector<8x1xf32> to vector<8x8xf32>
    %34 = arith.subf %30, %33 : vector<8x8xf32>
    %35 = math.exp %34 : vector<8x8xf32>
    %cst_21 = arith.constant dense<0.000000e+00> : vector<8xf32>
    %36 = vector.multi_reduction <add>, %35, %cst_21 [1] : vector<8x8xf32> to vector<8xf32>
    %37 = vector.shape_cast %36 : vector<8xf32> to vector<8x1xf32>
    %38 = arith.truncf %35 : vector<8x8xf32> to vector<8x8xbf16>
    %cst_22 = arith.constant dense<0.000000e+00> : vector<8x16xf32>
    %39 = tpu.matmul %38, %29, %cst_22 {dimension_numbers = #tpu.dot_dimension_numbers<[1], [0], [0], [1], [0, 0, 1, 1], [], []>} : vector<8x8xbf16>, vector<8x16xbf16>, vector<8x16xf32> -> vector<8x16xf32>
    %40 = tpu.reciprocal %37 {approx = true} : vector<8x1xf32> -> vector<8x1xf32>
    %41 = vector.broadcast %40 : vector<8x1xf32> to vector<8x16xf32>
    %42 = arith.mulf %39, %41 : vector<8x16xf32>
    %43 = arith.truncf %42 : vector<8x16xf32> to vector<8x16xbf16>
    %c0_23 = arith.constant 0 : index
    %c0_24 = arith.constant 0 : index
    %44 = vector.load %arg13[%c0_23, %c0_24] : memref<16x64xbf16, #tpu.memory_space<vmem>>, vector<8x16xbf16>
    tpu.vector_store %arg13[%c0_23, %c0_24], %43 {strides = array<i32>} : memref<16x64xbf16, #tpu.memory_space<vmem>>, vector<8x16xbf16>,
    %45 = vector.extract_strided_slice %24 {offsets = [0, 16], sizes = [8, 16], strides = [1, 1]} : vector<8x64xbf16> to vector<8x16xbf16>
    %46 = vector.extract_strided_slice %25 {offsets = [0, 16], sizes = [8, 16], strides = [1, 1]} : vector<8x64xbf16> to vector<8x16xbf16>
    %47 = vector.extract_strided_slice %26 {offsets = [0, 16], sizes = [8, 16], strides = [1, 1]} : vector<8x64xbf16> to vector<8x16xbf16>
    %cst_25 = arith.constant dense<0.000000e+00> : vector<8x8xf32>
    %48 = tpu.matmul %45, %46, %cst_25 {dimension_numbers = #tpu.dot_dimension_numbers<[1], [1], [0], [0], [0, 0, 1, 0], [], []>} : vector<8x16xbf16>, vector<8x16xbf16>, vector<8x8xf32> -> vector<8x8xf32>
    %cst_26 = arith.constant dense<0xFF800000> : vector<8xf32>
    %49 = vector.multi_reduction <maximumf>, %48, %cst_26 [1] : vector<8x8xf32> to vector<8xf32>
    %50 = vector.shape_cast %49 : vector<8xf32> to vector<8x1xf32>
    %51 = vector.broadcast %50 : vector<8x1xf32> to vector<8x8xf32>
    %52 = arith.subf %48, %51 : vector<8x8xf32>
    %53 = math.exp %52 : vector<8x8xf32>
    %cst_27 = arith.constant dense<0.000000e+00> : vector<8xf32>
    %54 = vector.multi_reduction <add>, %53, %cst_27 [1] : vector<8x8xf32> to vector<8xf32>
    %55 = vector.shape_cast %54 : vector<8xf32> to vector<8x1xf32>
    %56 = arith.truncf %53 : vector<8x8xf32> to vector<8x8xbf16>
    %cst_28 = arith.constant dense<0.000000e+00> : vector<8x16xf32>
    %57 = tpu.matmul %56, %47, %cst_28 {dimension_numbers = #tpu.dot_dimension_numbers<[1], [0], [0], [1], [0, 0, 1, 1], [], []>} : vector<8x8xbf16>, vector<8x16xbf16>, vector<8x16xf32> -> vector<8x16xf32>
    %58 = tpu.reciprocal %55 {approx = true} : vector<8x1xf32> -> vector<8x1xf32>
    %59 = vector.broadcast %58 : vector<8x1xf32> to vector<8x16xf32>
    %60 = arith.mulf %57, %59 : vector<8x16xf32>
    %61 = arith.truncf %60 : vector<8x16xf32> to vector<8x16xbf16>
    %c0_29 = arith.constant 0 : index
    %c16 = arith.constant 16 : index
    %62 = vector.load %arg13[%c0_29, %c16] : memref<16x64xbf16, #tpu.memory_space<vmem>>, vector<8x16xbf16>
    tpu.vector_store %arg13[%c0_29, %c16], %61 {strides = array<i32>} : memref<16x64xbf16, #tpu.memory_space<vmem>>, vector<8x16xbf16>,
    %63 = vector.extract_strided_slice %24 {offsets = [0, 32], sizes = [8, 16], strides = [1, 1]} : vector<8x64xbf16> to vector<8x16xbf16>
    %64 = vector.extract_strided_slice %25 {offsets = [0, 32], sizes = [8, 16], strides = [1, 1]} : vector<8x64xbf16> to vector<8x16xbf16>
    %65 = vector.extract_strided_slice %26 {offsets = [0, 32], sizes = [8, 16], strides = [1, 1]} : vector<8x64xbf16> to vector<8x16xbf16>
    %cst_30 = arith.constant dense<0.000000e+00> : vector<8x8xf32>
    %66 = tpu.matmul %63, %64, %cst_30 {dimension_numbers = #tpu.dot_dimension_numbers<[1], [1], [0], [0], [0, 0, 1, 0], [], []>} : vector<8x16xbf16>, vector<8x16xbf16>, vector<8x8xf32> -> vector<8x8xf32>
    %cst_31 = arith.constant dense<0xFF800000> : vector<8xf32>
    %67 = vector.multi_reduction <maximumf>, %66, %cst_31 [1] : vector<8x8xf32> to vector<8xf32>
    %68 = vector.shape_cast %67 : vector<8xf32> to vector<8x1xf32>
    %69 = vector.broadcast %68 : vector<8x1xf32> to vector<8x8xf32>
    %70 = arith.subf %66, %69 : vector<8x8xf32>
    %71 = math.exp %70 : vector<8x8xf32>
    %cst_32 = arith.constant dense<0.000000e+00> : vector<8xf32>
    %72 = vector.multi_reduction <add>, %71, %cst_32 [1] : vector<8x8xf32> to vector<8xf32>
    %73 = vector.shape_cast %72 : vector<8xf32> to vector<8x1xf32>
    %74 = arith.truncf %71 : vector<8x8xf32> to vector<8x8xbf16>
    %cst_33 = arith.constant dense<0.000000e+00> : vector<8x16xf32>
    %75 = tpu.matmul %74, %65, %cst_33 {dimension_numbers = #tpu.dot_dimension_numbers<[1], [0], [0], [1], [0, 0, 1, 1], [], []>} : vector<8x8xbf16>, vector<8x16xbf16>, vector<8x16xf32> -> vector<8x16xf32>
    %76 = tpu.reciprocal %73 {approx = true} : vector<8x1xf32> -> vector<8x1xf32>
    %77 = vector.broadcast %76 : vector<8x1xf32> to vector<8x16xf32>
    %78 = arith.mulf %75, %77 : vector<8x16xf32>
    %79 = arith.truncf %78 : vector<8x16xf32> to vector<8x16xbf16>
    %c0_34 = arith.constant 0 : index
    %c32 = arith.constant 32 : index
    %80 = vector.load %arg13[%c0_34, %c32] : memref<16x64xbf16, #tpu.memory_space<vmem>>, vector<8x16xbf16>
    tpu.vector_store %arg13[%c0_34, %c32], %79 {strides = array<i32>} : memref<16x64xbf16, #tpu.memory_space<vmem>>, vector<8x16xbf16>,
    %81 = vector.extract_strided_slice %24 {offsets = [0, 48], sizes = [8, 16], strides = [1, 1]} : vector<8x64xbf16> to vector<8x16xbf16>
    %82 = vector.extract_strided_slice %25 {offsets = [0, 48], sizes = [8, 16], strides = [1, 1]} : vector<8x64xbf16> to vector<8x16xbf16>
    %83 = vector.extract_strided_slice %26 {offsets = [0, 48], sizes = [8, 16], strides = [1, 1]} : vector<8x64xbf16> to vector<8x16xbf16>
    %cst_35 = arith.constant dense<0.000000e+00> : vector<8x8xf32>
    %84 = tpu.matmul %81, %82, %cst_35 {dimension_numbers = #tpu.dot_dimension_numbers<[1], [1], [0], [0], [0, 0, 1, 0], [], []>} : vector<8x16xbf16>, vector<8x16xbf16>, vector<8x8xf32> -> vector<8x8xf32>
    %cst_36 = arith.constant dense<0xFF800000> : vector<8xf32>
    %85 = vector.multi_reduction <maximumf>, %84, %cst_36 [1] : vector<8x8xf32> to vector<8xf32>
    %86 = vector.shape_cast %85 : vector<8xf32> to vector<8x1xf32>
    %87 = vector.broadcast %86 : vector<8x1xf32> to vector<8x8xf32>
    %88 = arith.subf %84, %87 : vector<8x8xf32>
    %89 = math.exp %88 : vector<8x8xf32>
    %cst_37 = arith.constant dense<0.000000e+00> : vector<8xf32>
    %90 = vector.multi_reduction <add>, %89, %cst_37 [1] : vector<8x8xf32> to vector<8xf32>
    %91 = vector.shape_cast %90 : vector<8xf32> to vector<8x1xf32>
    %92 = arith.truncf %89 : vector<8x8xf32> to vector<8x8xbf16>
    %cst_38 = arith.constant dense<0.000000e+00> : vector<8x16xf32>
    %93 = tpu.matmul %92, %83, %cst_38 {dimension_numbers = #tpu.dot_dimension_numbers<[1], [0], [0], [1], [0, 0, 1, 1], [], []>} : vector<8x8xbf16>, vector<8x16xbf16>, vector<8x16xf32> -> vector<8x16xf32>
    %94 = tpu.reciprocal %91 {approx = true} : vector<8x1xf32> -> vector<8x1xf32>
    %95 = vector.broadcast %94 : vector<8x1xf32> to vector<8x16xf32>
    %96 = arith.mulf %93, %95 : vector<8x16xf32>
    %97 = arith.truncf %96 : vector<8x16xf32> to vector<8x16xbf16>
    %c0_39 = arith.constant 0 : index
    %c48 = arith.constant 48 : index
    %98 = vector.load %arg13[%c0_39, %c48] : memref<16x64xbf16, #tpu.memory_space<vmem>>, vector<8x16xbf16>
    tpu.vector_store %arg13[%c0_39, %c48], %97 {strides = array<i32>} : memref<16x64xbf16, #tpu.memory_space<vmem>>, vector<8x16xbf16>,
    %99 = vector.extract_strided_slice %11 {offsets = [8, 0], sizes = [8, 64], strides = [1, 1]} : vector<16x64xbf16> to vector<8x64xbf16>
    %100 = vector.extract_strided_slice %17 {offsets = [8, 0], sizes = [8, 64], strides = [1, 1]} : vector<16x64xbf16> to vector<8x64xbf16>
    %101 = vector.extract_strided_slice %23 {offsets = [8, 0], sizes = [8, 64], strides = [1, 1]} : vector<16x64xbf16> to vector<8x64xbf16>
    %102 = vector.extract_strided_slice %99 {offsets = [0, 0], sizes = [8, 16], strides = [1, 1]} : vector<8x64xbf16> to vector<8x16xbf16>
    %103 = vector.extract_strided_slice %100 {offsets = [0, 0], sizes = [8, 16], strides = [1, 1]} : vector<8x64xbf16> to vector<8x16xbf16>
    %104 = vector.extract_strided_slice %101 {offsets = [0, 0], sizes = [8, 16], strides = [1, 1]} : vector<8x64xbf16> to vector<8x16xbf16>
    %cst_40 = arith.constant dense<0.000000e+00> : vector<8x8xf32>
    %105 = tpu.matmul %102, %103, %cst_40 {dimension_numbers = #tpu.dot_dimension_numbers<[1], [1], [0], [0], [0, 0, 1, 0], [], []>} : vector<8x16xbf16>, vector<8x16xbf16>, vector<8x8xf32> -> vector<8x8xf32>
    %cst_41 = arith.constant dense<0xFF800000> : vector<8xf32>
    %106 = vector.multi_reduction <maximumf>, %105, %cst_41 [1] : vector<8x8xf32> to vector<8xf32>
    %107 = vector.shape_cast %106 : vector<8xf32> to vector<8x1xf32>
    %108 = vector.broadcast %107 : vector<8x1xf32> to vector<8x8xf32>
    %109 = arith.subf %105, %108 : vector<8x8xf32>
    %110 = math.exp %109 : vector<8x8xf32>
    %cst_42 = arith.constant dense<0.000000e+00> : vector<8xf32>
    %111 = vector.multi_reduction <add>, %110, %cst_42 [1] : vector<8x8xf32> to vector<8xf32>
    %112 = vector.shape_cast %111 : vector<8xf32> to vector<8x1xf32>
    %113 = arith.truncf %110 : vector<8x8xf32> to vector<8x8xbf16>
    %cst_43 = arith.constant dense<0.000000e+00> : vector<8x16xf32>
    %114 = tpu.matmul %113, %104, %cst_43 {dimension_numbers = #tpu.dot_dimension_numbers<[1], [0], [0], [1], [0, 0, 1, 1], [], []>} : vector<8x8xbf16>, vector<8x16xbf16>, vector<8x16xf32> -> vector<8x16xf32>
    %115 = tpu.reciprocal %112 {approx = true} : vector<8x1xf32> -> vector<8x1xf32>
    %116 = vector.broadcast %115 : vector<8x1xf32> to vector<8x16xf32>
    %117 = arith.mulf %114, %116 : vector<8x16xf32>
    %118 = arith.truncf %117 : vector<8x16xf32> to vector<8x16xbf16>
    %c8 = arith.constant 8 : index
    %c0_44 = arith.constant 0 : index
    %119 = vector.load %arg13[%c8, %c0_44] : memref<16x64xbf16, #tpu.memory_space<vmem>>, vector<8x16xbf16>
    tpu.vector_store %arg13[%c8, %c0_44], %118 {strides = array<i32>} : memref<16x64xbf16, #tpu.memory_space<vmem>>, vector<8x16xbf16>,
    %120 = vector.extract_strided_slice %99 {offsets = [0, 16], sizes = [8, 16], strides = [1, 1]} : vector<8x64xbf16> to vector<8x16xbf16>
    %121 = vector.extract_strided_slice %100 {offsets = [0, 16], sizes = [8, 16], strides = [1, 1]} : vector<8x64xbf16> to vector<8x16xbf16>
    %122 = vector.extract_strided_slice %101 {offsets = [0, 16], sizes = [8, 16], strides = [1, 1]} : vector<8x64xbf16> to vector<8x16xbf16>
    %cst_45 = arith.constant dense<0.000000e+00> : vector<8x8xf32>
    %123 = tpu.matmul %120, %121, %cst_45 {dimension_numbers = #tpu.dot_dimension_numbers<[1], [1], [0], [0], [0, 0, 1, 0], [], []>} : vector<8x16xbf16>, vector<8x16xbf16>, vector<8x8xf32> -> vector<8x8xf32>
    %cst_46 = arith.constant dense<0xFF800000> : vector<8xf32>
    %124 = vector.multi_reduction <maximumf>, %123, %cst_46 [1] : vector<8x8xf32> to vector<8xf32>
    %125 = vector.shape_cast %124 : vector<8xf32> to vector<8x1xf32>
    %126 = vector.broadcast %125 : vector<8x1xf32> to vector<8x8xf32>
    %127 = arith.subf %123, %126 : vector<8x8xf32>
    %128 = math.exp %127 : vector<8x8xf32>
    %cst_47 = arith.constant dense<0.000000e+00> : vector<8xf32>
    %129 = vector.multi_reduction <add>, %128, %cst_47 [1] : vector<8x8xf32> to vector<8xf32>
    %130 = vector.shape_cast %129 : vector<8xf32> to vector<8x1xf32>
    %131 = arith.truncf %128 : vector<8x8xf32> to vector<8x8xbf16>
    %cst_48 = arith.constant dense<0.000000e+00> : vector<8x16xf32>
    %132 = tpu.matmul %131, %122, %cst_48 {dimension_numbers = #tpu.dot_dimension_numbers<[1], [0], [0], [1], [0, 0, 1, 1], [], []>} : vector<8x8xbf16>, vector<8x16xbf16>, vector<8x16xf32> -> vector<8x16xf32>
    %133 = tpu.reciprocal %130 {approx = true} : vector<8x1xf32> -> vector<8x1xf32>
    %134 = vector.broadcast %133 : vector<8x1xf32> to vector<8x16xf32>
    %135 = arith.mulf %132, %134 : vector<8x16xf32>
    %136 = arith.truncf %135 : vector<8x16xf32> to vector<8x16xbf16>
    %c8_49 = arith.constant 8 : index
    %c16_50 = arith.constant 16 : index
    %137 = vector.load %arg13[%c8_49, %c16_50] : memref<16x64xbf16, #tpu.memory_space<vmem>>, vector<8x16xbf16>
    tpu.vector_store %arg13[%c8_49, %c16_50], %136 {strides = array<i32>} : memref<16x64xbf16, #tpu.memory_space<vmem>>, vector<8x16xbf16>,
    %138 = vector.extract_strided_slice %99 {offsets = [0, 32], sizes = [8, 16], strides = [1, 1]} : vector<8x64xbf16> to vector<8x16xbf16>
    %139 = vector.extract_strided_slice %100 {offsets = [0, 32], sizes = [8, 16], strides = [1, 1]} : vector<8x64xbf16> to vector<8x16xbf16>
    %140 = vector.extract_strided_slice %101 {offsets = [0, 32], sizes = [8, 16], strides = [1, 1]} : vector<8x64xbf16> to vector<8x16xbf16>
    %cst_51 = arith.constant dense<0.000000e+00> : vector<8x8xf32>
    %141 = tpu.matmul %138, %139, %cst_51 {dimension_numbers = #tpu.dot_dimension_numbers<[1], [1], [0], [0], [0, 0, 1, 0], [], []>} : vector<8x16xbf16>, vector<8x16xbf16>, vector<8x8xf32> -> vector<8x8xf32>
    %cst_52 = arith.constant dense<0xFF800000> : vector<8xf32>
    %142 = vector.multi_reduction <maximumf>, %141, %cst_52 [1] : vector<8x8xf32> to vector<8xf32>
    %143 = vector.shape_cast %142 : vector<8xf32> to vector<8x1xf32>
    %144 = vector.broadcast %143 : vector<8x1xf32> to vector<8x8xf32>
    %145 = arith.subf %141, %144 : vector<8x8xf32>
    %146 = math.exp %145 : vector<8x8xf32>
    %cst_53 = arith.constant dense<0.000000e+00> : vector<8xf32>
    %147 = vector.multi_reduction <add>, %146, %cst_53 [1] : vector<8x8xf32> to vector<8xf32>
    %148 = vector.shape_cast %147 : vector<8xf32> to vector<8x1xf32>
    %149 = arith.truncf %146 : vector<8x8xf32> to vector<8x8xbf16>
    %cst_54 = arith.constant dense<0.000000e+00> : vector<8x16xf32>
    %150 = tpu.matmul %149, %140, %cst_54 {dimension_numbers = #tpu.dot_dimension_numbers<[1], [0], [0], [1], [0, 0, 1, 1], [], []>} : vector<8x8xbf16>, vector<8x16xbf16>, vector<8x16xf32> -> vector<8x16xf32>
    %151 = tpu.reciprocal %148 {approx = true} : vector<8x1xf32> -> vector<8x1xf32>
    %152 = vector.broadcast %151 : vector<8x1xf32> to vector<8x16xf32>
    %153 = arith.mulf %150, %152 : vector<8x16xf32>
    %154 = arith.truncf %153 : vector<8x16xf32> to vector<8x16xbf16>
    %c8_55 = arith.constant 8 : index
    %c32_56 = arith.constant 32 : index
    %155 = vector.load %arg13[%c8_55, %c32_56] : memref<16x64xbf16, #tpu.memory_space<vmem>>, vector<8x16xbf16>
    tpu.vector_store %arg13[%c8_55, %c32_56], %154 {strides = array<i32>} : memref<16x64xbf16, #tpu.memory_space<vmem>>, vector<8x16xbf16>,
    %156 = vector.extract_strided_slice %99 {offsets = [0, 48], sizes = [8, 16], strides = [1, 1]} : vector<8x64xbf16> to vector<8x16xbf16>
    %157 = vector.extract_strided_slice %100 {offsets = [0, 48], sizes = [8, 16], strides = [1, 1]} : vector<8x64xbf16> to vector<8x16xbf16>
    %158 = vector.extract_strided_slice %101 {offsets = [0, 48], sizes = [8, 16], strides = [1, 1]} : vector<8x64xbf16> to vector<8x16xbf16>
    %cst_57 = arith.constant dense<0.000000e+00> : vector<8x8xf32>
    %159 = tpu.matmul %156, %157, %cst_57 {dimension_numbers = #tpu.dot_dimension_numbers<[1], [1], [0], [0], [0, 0, 1, 0], [], []>} : vector<8x16xbf16>, vector<8x16xbf16>, vector<8x8xf32> -> vector<8x8xf32>
    %cst_58 = arith.constant dense<0xFF800000> : vector<8xf32>
    %160 = vector.multi_reduction <maximumf>, %159, %cst_58 [1] : vector<8x8xf32> to vector<8xf32>
    %161 = vector.shape_cast %160 : vector<8xf32> to vector<8x1xf32>
    %162 = vector.broadcast %161 : vector<8x1xf32> to vector<8x8xf32>
    %163 = arith.subf %159, %162 : vector<8x8xf32>
    %164 = math.exp %163 : vector<8x8xf32>
    %cst_59 = arith.constant dense<0.000000e+00> : vector<8xf32>
    %165 = vector.multi_reduction <add>, %164, %cst_59 [1] : vector<8x8xf32> to vector<8xf32>
    %166 = vector.shape_cast %165 : vector<8xf32> to vector<8x1xf32>
    %167 = arith.truncf %164 : vector<8x8xf32> to vector<8x8xbf16>
    %cst_60 = arith.constant dense<0.000000e+00> : vector<8x16xf32>
    %168 = tpu.matmul %167, %158, %cst_60 {dimension_numbers = #tpu.dot_dimension_numbers<[1], [0], [0], [1], [0, 0, 1, 1], [], []>} : vector<8x8xbf16>, vector<8x16xbf16>, vector<8x16xf32> -> vector<8x16xf32>
    %169 = tpu.reciprocal %166 {approx = true} : vector<8x1xf32> -> vector<8x1xf32>
    %170 = vector.broadcast %169 : vector<8x1xf32> to vector<8x16xf32>
    %171 = arith.mulf %168, %170 : vector<8x16xf32>
    %172 = arith.truncf %171 : vector<8x16xf32> to vector<8x16xbf16>
    %c8_61 = arith.constant 8 : index
    %c48_62 = arith.constant 48 : index
    %173 = vector.load %arg13[%c8_61, %c48_62] : memref<16x64xbf16, #tpu.memory_space<vmem>>, vector<8x16xbf16>
    tpu.vector_store %arg13[%c8_61, %c48_62], %172 {strides = array<i32>} : memref<16x64xbf16, #tpu.memory_space<vmem>>, vector<8x16xbf16>,
    %c0_63 = arith.constant 0 : index
    %c0_64 = arith.constant 0 : index
    %174 = vector.load %arg13[%c0_63, %c0_64] : memref<16x64xbf16, #tpu.memory_space<vmem>>, vector<16x64xbf16>
    %c0_65 = arith.constant 0 : index
    %c0_66 = arith.constant 0 : index
    %175 = vector.load %arg10[%c0_65, %c0_66] : memref<64x128xbf16, #tpu.memory_space<vmem>>, vector<64x128xbf16>
    %cst_67 = arith.constant dense<0.000000e+00> : vector<16x128xf32>
    %176 = tpu.matmul %174, %175, %cst_67 {dimension_numbers = #tpu.dot_dimension_numbers<[1], [0], [0], [1], [0, 0, 1, 1], [], []>} : vector<16x64xbf16>, vector<64x128xbf16>, vector<16x128xf32> -> vector<16x128xf32>
    %c0_68 = arith.constant 0 : index
    %c0_69 = arith.constant 0 : index
    %177 = vector.load %arg11[%c0_68, %c0_69] : memref<1x128xf32, #tpu.memory_space<vmem>>, vector<1x128xf32>
    %178 = vector.broadcast %177 : vector<1x128xf32> to vector<16x128xf32>
    %179 = arith.addf %176, %178 : vector<16x128xf32>
    %180 = arith.truncf %179 : vector<16x128xf32> to vector<16x128xbf16>
    %c0_70 = arith.constant 0 : index
    %c0_71 = arith.constant 0 : index
    %181 = vector.load %arg12[%c0_70, %c0_71] : memref<16x128xbf16, #tpu.memory_space<vmem>>, vector<16x128xbf16>
    tpu.vector_store %arg12[%c0_70, %c0_71], %180 {strides = array<i32>} : memref<16x128xbf16, #tpu.memory_space<vmem>>, vector<16x128xbf16>,
    return
  }
  func.func @transform_0(%arg0: i32) -> (i32, i32) {
    %c0_i32 = arith.constant 0 : i32
    %c0_i32_0 = arith.constant 0 : i32
    return %arg0, %c0_i32 : i32, i32
  }
  func.func @transform_1(%arg0: i32) -> (i32, i32) {
    %c0_i32 = arith.constant 0 : i32
    %c0_i32_0 = arith.constant 0 : i32
    return %arg0, %c0_i32 : i32, i32
  }
  func.func @transform_2(%arg0: i32) -> (i32, i32) {
    %c0_i32 = arith.constant 0 : i32
    %c0_i32_0 = arith.constant 0 : i32
    return %arg0, %c0_i32 : i32, i32
  }
  func.func @transform_3(%arg0: i32) -> (i32, i32) {
    %c0_i32 = arith.constant 0 : i32
    %c0_i32_0 = arith.constant 0 : i32
    %c0_i32_1 = arith.constant 0 : i32
    return %c0_i32, %c0_i32_0 : i32, i32
  }
  func.func @transform_4(%arg0: i32) -> (i32, i32) {
    %c0_i32 = arith.constant 0 : i32
    %c0_i32_0 = arith.constant 0 : i32
    %c0_i32_1 = arith.constant 0 : i32
    return %c0_i32, %c0_i32_0 : i32, i32
  }
  func.func @transform_5(%arg0: i32) -> (i32, i32) {
    %c0_i32 = arith.constant 0 : i32
    %c0_i32_0 = arith.constant 0 : i32
    %c0_i32_1 = arith.constant 0 : i32
    return %c0_i32, %c0_i32_0 : i32, i32
  }
  func.func @transform_6(%arg0: i32) -> (i32, i32) {
    %c0_i32 = arith.constant 0 : i32
    %c0_i32_0 = arith.constant 0 : i32
    %c0_i32_1 = arith.constant 0 : i32
    return %c0_i32, %c0_i32_0 : i32, i32
  }
  func.func @transform_7(%arg0: i32) -> (i32, i32) {
    %c0_i32 = arith.constant 0 : i32
    %c0_i32_0 = arith.constant 0 : i32
    %c0_i32_1 = arith.constant 0 : i32
    return %c0_i32, %c0_i32_0 : i32, i32
  }
  func.func @transform_8(%arg0: i32) -> (i32, i32) {
    %c0_i32 = arith.constant 0 : i32
    %c0_i32_0 = arith.constant 0 : i32
    %c0_i32_1 = arith.constant 0 : i32
    return %c0_i32, %c0_i32_0 : i32, i32
  }
  func.func @transform_9(%arg0: i32) -> (i32, i32) {
    %c0_i32 = arith.constant 0 : i32
    %c0_i32_0 = arith.constant 0 : i32
    %c0_i32_1 = arith.constant 0 : i32
    return %c0_i32, %c0_i32_0 : i32, i32
  }
  func.func @transform_10(%arg0: i32) -> (i32, i32) {
    %c0_i32 = arith.constant 0 : i32
    %c0_i32_0 = arith.constant 0 : i32
    %c0_i32_1 = arith.constant 0 : i32
    return %c0_i32, %c0_i32_0 : i32, i32
  }
  func.func @transform_11(%arg0: i32) -> (i32, i32) {
    %c0_i32 = arith.constant 0 : i32
    %c0_i32_0 = arith.constant 0 : i32
    return %arg0, %c0_i32 : i32, i32
  }
}

</mosaic_0001>

<bundles_post_ra>
// kernel: tpu_custom_call.1
= control target key start
LH: loop header
LB: loop body
LE: loop exit
PB: predicated region body
PF: predicated region fallthrough
CT: control target
= control target key end

     0   :  { %16 = vsyncpa [#allocation4], 0  ;;  %s2264_s0 = inlined_call_operand.hbm [shape: f32[16,32], index: 0, kind: input, shape index: {}]   ;;  %s2265_s1 = inlined_call_operand.hbm [shape: f32[16,32], index: 1, kind: input, shape index: {}]   ;;  %s2266_s2 = inlined_call_operand.hbm [shape: f32[16,32], index: 2, kind: input, shape index: {}]   ;;  %s2267_s3 = inlined_call_operand.hbm [shape: bf16[32,64], index: 3, kind: input, shape index: {}]   ;;  %s2268_s4 = inlined_call_operand.vmem [shape: f32[1,64], index: 4, kind: input, shape index: {}]   ;;  %s2269_s5 = inlined_call_operand.hbm [shape: bf16[32,64], index: 5, kind: input, shape index: {}]   ;;  %s2270_s6 = inlined_call_operand.vmem [shape: f32[1,64], index: 6, kind: input, shape index: {}]   ;;  %s2271_s7 = inlined_call_operand.hbm [shape: bf16[32,64], index: 7, kind: input, shape index: {}]   ;;  %s2272_s8 = inlined_call_operand.hbm [shape: f32[1,64], index: 8, kind: input, shape index: {}]   ;;  %s2273_s9 = inlined_call_operand.vmem [shape: bf16[64,128], index: 9, kind: input, shape index: {}]   ;;  %s2274_s10 = inlined_call_operand.vmem [shape: f32[1,128], index: 10, kind: input, shape index: {}]   ;;  %s2275_s11 = inlined_call_operand.hbm [shape: bf16[16,128], index: 11, kind: output, shape index: {}]  }
   0x1   :  { %17 = vsyncpa [#allocation7], 0 }
   0x2   :  { %18 = vsyncpa [#allocation10], 0 }
   0x3   :  { %19 = vsyncpa [#allocation13], 0 }
   0x4   :  { %20 = vsyncpa [#allocation5], 0  ;;  %s1862_s17 = smov [#allocation6]   ;;  %s1863_s19 = smov [#allocation9]  }
   0x5   :  { %s38_s18 = sshll.u32 %s1862_s17, 4  ;;  %s62_s20 = sshll.u32 %s1863_s19, 4  ;;  %s39_s18 = int_to_ptr.vmem [resolvable:$true] %s38_s18  ;;  %s1942_s20 = int_to_ptr.vmem [resolvable:$true] %s62_s20 }
   0x6   :  { %s1676_s23 = scalar_lea.hbm %s2265_s1, 256 }
   0x7   :  { %p1677_p0 = scmp.ne.s32.totalorder %s2265_s1, %s1676_s23  ;;  %p1680_p1 = scmp.lt.u32.totalorder %s1676_s23, %s2265_s1 }
   0x9   :  { %p1682_p2 = pnand %p1680_p1, %p1677_p0 }
   0xb   :  { %1685 = shalt.err (!%p1682_p2)
}
   0xc   :  { %s1686_s28 = scalar_lea.vmem %s39_s18, 256  ;;  %p1691_p4 = scmp.lt.s32.totalorder %s39_s18, %s39_s18 }
   0xd   :  { %p1687_p3 = scmp.ne.s32.totalorder %s39_s18, %s1686_s28  ;;  %p1692_p5 = scmp.lt.s32.totalorder %s1686_s28, %s1686_s28 }
   0xf   :  { %p1693_p6 = por %p1692_p5, %p1691_p4 }
  0x11   :  { %p1694_p7 = pnand %p1693_p6, %p1687_p3 }
  0x13   :  { %1697 = shalt.err (!%p1694_p7)
}
  0x14   :  { %s1864_s29 = smov 128   ;;  %s1865_s30 = smov 8  }
  0x15   :  { %44 = dma.hbm_to_vmem [thread:$0]  %s2265_s1, 256, %s39_s18, [#allocation7], %s1864_s29, %s1864_s29, %s1865_s30  }
  0x16   :  { %s1698_s16 = scalar_lea.hbm %s2267_s3, 256 }
  0x17   :  { %p1699_p8 = scmp.ne.s32.totalorder %s2267_s3, %s1698_s16  ;;  %p1702_p9 = scmp.lt.u32.totalorder %s1698_s16, %s2267_s3 }
  0x19   :  { %p1704_p10 = pnand %p1702_p9, %p1699_p8 }
  0x1b   :  { %1707 = shalt.err (!%p1704_p10)
}
  0x1c   :  { %s1708_s23 = scalar_lea.vmem %s1942_s20, 256  ;;  %p1713_p12 = scmp.lt.s32.totalorder %s1942_s20, %s1942_s20 }
  0x1d   :  { %p1709_p11 = scmp.ne.s32.totalorder %s1942_s20, %s1708_s23  ;;  %p1714_p13 = scmp.lt.s32.totalorder %s1708_s23, %s1708_s23 }
  0x1f   :  { %p1715_p0 = por %p1714_p13, %p1713_p12 }
  0x21   :  { %p1716_p1 = pnand %p1715_p0, %p1709_p11 }
  0x23   :  { %1719 = shalt.err (!%p1716_p1)
}
  0x24   :  { %s1866_s1 = smov 64   ;;  %s1867_s18 = smov 4  }
  0x25   :  { %68 = dma.hbm_to_vmem [thread:$0]  %s2267_s3, 256, %s1942_s20, [#allocation10], %s1866_s1, %s1866_s1, %s1867_s18  }
  0x26   :  { %s1868_s26 = smov [#allocation12]   ;;  %s1869_s28 = smov [#allocation3]  }
  0x27   :  { %s90_s27 = sshll.u32 %s1868_s26, 4  ;;  %s26_s12 = sshll.u32 %s1869_s28, 4  ;;  %s91_s27 = int_to_ptr.vmem [resolvable:$true] %s90_s27  ;;  %s1979_s12 = int_to_ptr.vmem [resolvable:$true] %s26_s12 }
  0x28   :  { %s1720_s15 = scalar_lea.hbm %s2271_s7, 256 }
  0x29   :  { %p1721_p2 = scmp.ne.s32.totalorder %s2271_s7, %s1720_s15  ;;  %p1724_p3 = scmp.lt.u32.totalorder %s1720_s15, %s2271_s7 }
  0x2b   :  { %p1726_p4 = pnand %p1724_p3, %p1721_p2 }
  0x2d   :  { %1729 = shalt.err (!%p1726_p4)
}
  0x2e   :  { %s1730_s3 = scalar_lea.vmem %s91_s27, 256  ;;  %p1735_p6 = scmp.lt.s32.totalorder %s91_s27, %s91_s27 }
  0x2f   :  { %p1731_p5 = scmp.ne.s32.totalorder %s91_s27, %s1730_s3  ;;  %p1736_p7 = scmp.lt.s32.totalorder %s1730_s3, %s1730_s3 }
  0x31   :  { %p1737_p8 = por %p1736_p7, %p1735_p6 }
  0x33   :  { %p1738_p9 = pnand %p1737_p8, %p1731_p5 }
  0x35   :  { %1741 = shalt.err (!%p1738_p9)
}
  0x36   :  { %96 = dma.hbm_to_vmem [thread:$0]  %s2271_s7, 256, %s91_s27, [#allocation13], %s1866_s1, %s1866_s1, %s1867_s18  }
  0x37   :  { %s1742_s25 = scalar_lea.hbm %s2264_s0, 256 }
  0x38   :  { %p1743_p10 = scmp.ne.s32.totalorder %s2264_s0, %s1742_s25  ;;  %p1746_p11 = scmp.lt.u32.totalorder %s1742_s25, %s2264_s0 }
  0x3a   :  { %p1748_p12 = pnand %p1746_p11, %p1743_p10 }
  0x3c   :  { %1751 = shalt.err (!%p1748_p12)
}
  0x3d   :  { %s1752_s15 = scalar_lea.vmem %s1979_s12, 256  ;;  %p1757_p0 = scmp.lt.s32.totalorder %s1979_s12, %s1979_s12 }
  0x3e   :  { %p1753_p13 = scmp.ne.s32.totalorder %s1979_s12, %s1752_s15  ;;  %p1758_p1 = scmp.lt.s32.totalorder %s1752_s15, %s1752_s15 }
  0x40   :  { %p1759_p2 = por %p1758_p1, %p1757_p0 }
  0x42   :  { %p1760_p3 = pnand %p1759_p2, %p1753_p13 }
  0x44   :  { %1763 = shalt.err (!%p1760_p3)
}
  0x45   :  { %32 = dma.hbm_to_vmem [thread:$0]  %s2264_s0, 256, %s1979_s12, [#allocation4], %s1864_s29, %s1864_s29, %s1865_s30  }
  0x46   :  { %s1870_s16 = smov [#allocation8]   ;;  %s1871_s19 = smov [#allocation11]  }
  0x47   :  { %s50_s17 = sshll.u32 %s1870_s16, 4  ;;  %s76_s21 = sshll.u32 %s1871_s19, 4  ;;  %s51_s17 = int_to_ptr.vmem [resolvable:$true] %s50_s17  ;;  %s2016_s21 = int_to_ptr.vmem [resolvable:$true] %s76_s21 }
  0x48   :  { %s1764_s22 = scalar_lea.hbm %s2266_s2, 256 }
  0x49   :  { %p1765_p4 = scmp.ne.s32.totalorder %s2266_s2, %s1764_s22  ;;  %p1768_p5 = scmp.lt.u32.totalorder %s1764_s22, %s2266_s2 }
  0x4b   :  { %p1770_p6 = pnand %p1768_p5, %p1765_p4 }
  0x4d   :  { %1773 = shalt.err (!%p1770_p6)
}
  0x4e   :  { %s1774_s0 = scalar_lea.vmem %s51_s17, 256  ;;  %p1779_p8 = scmp.lt.s32.totalorder %s51_s17, %s51_s17 }
  0x4f   :  { %p1775_p7 = scmp.ne.s32.totalorder %s51_s17, %s1774_s0  ;;  %p1780_p9 = scmp.lt.s32.totalorder %s1774_s0, %s1774_s0 }
  0x51   :  { %p1781_p10 = por %p1780_p9, %p1779_p8 }
  0x53   :  { %p1782_p11 = pnand %p1781_p10, %p1775_p7 }
  0x55   :  { %1785 = shalt.err (!%p1782_p11)
}
  0x56   :  { %56 = dma.hbm_to_vmem [thread:$0]  %s2266_s2, 256, %s51_s17, [#allocation7], %s1864_s29, %s1864_s29, %s1865_s30  }
  0x57   :  { %s1786_s15 = scalar_lea.hbm %s2269_s5, 256 }
  0x58   :  { %p1787_p12 = scmp.ne.s32.totalorder %s2269_s5, %s1786_s15  ;;  %p1790_p13 = scmp.lt.u32.totalorder %s1786_s15, %s2269_s5 }
  0x5a   :  { %p1792_p0 = pnand %p1790_p13, %p1787_p12 }
  0x5c   :  { %1795 = shalt.err (!%p1792_p0)
}
  0x5d   :  { %s1796_s3 = scalar_lea.vmem %s2016_s21, 256  ;;  %p1801_p2 = scmp.lt.s32.totalorder %s2016_s21, %s2016_s21 }
  0x5e   :  { %p1797_p1 = scmp.ne.s32.totalorder %s2016_s21, %s1796_s3  ;;  %p1802_p3 = scmp.lt.s32.totalorder %s1796_s3, %s1796_s3 }
  0x60   :  { %p1803_p4 = por %p1802_p3, %p1801_p2 }
  0x62   :  { %p1804_p5 = pnand %p1803_p4, %p1797_p1 }
  0x64   :  { %1807 = shalt.err (!%p1804_p5)
}
  0x65   :  { %82 = dma.hbm_to_vmem [thread:$0]  %s2269_s5, 256, %s2016_s21, [#allocation10], %s1866_s1, %s1866_s1, %s1867_s18  }
  0x66   :  { %s1872_s30 = smov [#allocation14]   ;;  %s1808_s23 = scalar_lea.hbm %s2272_s8, 16 }
  0x67   :  { %s103_s17 = sshll.u32 %s1872_s30, 4  ;;  %p1809_p6 = scmp.ne.s32.totalorder %s2272_s8, %s1808_s23  ;;  %s104_s17 = int_to_ptr.vmem [resolvable:$true] %s103_s17 }
  0x68   :  { %p1812_p7 = scmp.lt.u32.totalorder %s1808_s23, %s2272_s8 }
  0x6a   :  { %p1814_p8 = pnand %p1812_p7, %p1809_p6 }
  0x6c   :  { %1817 = shalt.err (!%p1814_p8)
}
  0x6d   :  { %s1818_s12 = scalar_lea.vmem %s104_s17, 16  ;;  %s1822_s5 = scalar_lea.vmem %s104_s17, 32 }
  0x6e   :  { %p1819_p9 = scmp.ne.s32.totalorder %s104_s17, %s1818_s12  ;;  %p1823_p10 = scmp.lt.s32.totalorder %s104_s17, %s104_s17 }
  0x6f   :  { %p1824_p11 = scmp.lt.s32.totalorder %s1822_s5, %s1818_s12 }
  0x71   :  { %p1825_p12 = por %p1824_p11, %p1823_p10 }
  0x73   :  { %p1826_p13 = pnand %p1825_p12, %p1819_p9 }
  0x75   :  { %1829 = shalt.err (!%p1826_p13)
}
  0x76   :  { %106 = dma.hbm_to_vmem [thread:$0]  %s2272_s8, 16, %s104_s17, [#allocation13]  }
  0x77   :  { %1852 = dma.done.wait [#allocation4], 256  }
  0x78   :  { %1853 = vsyncadd [#allocation4], 4294967040 }
  0x79   :  { %1854 = dma.done.wait [#allocation7], 512  }
  0x7a   :  { %1855 = vsyncadd [#allocation7], 4294966784 }
  0x7b   :  { %1856 = dma.done.wait [#allocation10], 512  }
  0x7c   :  { %1857 = vsyncadd [#allocation10], 4294966784 }
  0x7d   :  { %1858 = dma.done.wait [#allocation13], 272  }
  0x7e   :  { %1859 = vsyncadd [#allocation13], 4294967024  ;;  %v1873_v0 = vmov 0.0   ;;  %vm1874_vm0 = vmmov 0   ;;  %v1634_v1 = vld [vmem:[#allocation11] sm:$0xff]   ;;  %v1635_v2 = vld [vmem:[#allocation9] sm:$0xff]  }
  0x7f   :  { %1490 = vmatprep.subr.bf16.mxu1 %v1873_v0  ;;  %1482 = vmatprep.subr.bf16.mxu0 %v1873_v0  ;;  %v1636_v3 = vld [vmem:[#allocation11 + $0x8] sm:$0xff]   ;;  %v136_v4 = vld [vmem:[#allocation6] sm:$0xff]  ;;  %v137_v5 = vld [vmem:[#allocation6 + $0x8] sm:$0xff]  ;;  %vm165_vm1 = vcmask 261120   ;;  %vm347_vm2 = vcmask 130048   ;;  %s1877_s7 = smov 80  }
  0x80   :  { %1494 = vmatprep.mubr.msk.bf16.mxu1 %vm1874_vm0, %v1873_v0  ;;  %1486 = vmatprep.mubr.msk.bf16.mxu0 %vm1874_vm0, %v1873_v0  ;;  %v1637_v6 = vld [vmem:[#allocation9 + $0x8] sm:$0xff]   ;;  %v133_v7 = vld [vmem:[#allocation3] sm:$0xff]  ;;  %v138_v8 = vpack.c.bf16 %v137_v5, %v136_v4  ;;  %v134_v9 = vld [vmem:[#allocation3 + $0x8] sm:$0xff]  ;;  %vm394_vm3 = vcmask 64512   ;;  %vm408_vm4 = vcmask 1043456   ;;  %s1878_s27 = smov 16  }
  0x81   :  { %1491 = vmatpush3.bf16.msra.mxu1 %v1634_v1  ;;  %1483 = vmatpush3.bf16.msra.mxu0 %v1635_v2  ;;  %v135_v10 = vpack.c.bf16 %v134_v9, %v133_v7  ;;  %v1393_v11 = vld [vmem:[%s2268_s4] ss:$0 sm:$0xff]  ;;  %v1638_v23 = vld [vmem:[#allocation12] sm:$0xff]   ;;  %s1875_s4 = smov 96   ;;  %v139_v30 = vld [vmem:[#allocation8] sm:$0xff]  ;;  %vm455_vm5 = vcmask 125952  }
  0x82   :  { %1492 = vmatprep.subr.bf16.mxu1 %v1873_v0  ;;  %1484 = vmatprep.subr.bf16.mxu0 %v1873_v0  ;;  %v1397_v12 = vld [vmem:[%s2270_s6] ss:$0 sm:$0xff]  ;;  %s1876_s6 = smov 112   ;;  %v140_v31 = vld [vmem:[#allocation8 + $0x8] sm:$0xff]  ;;  %v1401_v54 = vld [vmem:[#allocation14] ss:$0 sm:$0xff] }
  0x83   :  { %v1639_v28 = vld [vmem:[#allocation12 + $0x8] sm:$0xff]   ;;  %v141_v32 = vpack.c.bf16 %v140_v31, %v139_v30  ;;  %s1879_s16 = smov 32   ;;  %vm922_vm6 = vcmask 130052   ;;  %s1880_s20 = smov 48   ;;  %vm575_vm7 = vcmask 257152   ;;  %vm692_vm8 = vcmask 388352  }
  0x84   :  { %vm1040_vm9 = vcmask 261252   ;;  %vm809_vm10 = vcmask 519552   ;;  %vm1158_vm11 = vcmask 392452   ;;  %vm1276_vm12 = vcmask 523652   ;;  %s1881_s25 = smov [#allocation15]  }
  0x85   :  { %1493 = vmatpush3.bf16.msra.mxu1 %v1636_v3  ;;  %1485 = vmatpush3.bf16.msra.mxu0 %v1637_v6  ;;  %vm1318_vm13 = vcmask 523264   ;;  %s1378_s26 = sshll.u32 %s1881_s25, 4  ;;  %s1379_s26 = int_to_ptr.vmem [resolvable:$true] %s1378_s26 }
  0x86   :  { %1506 = vmatprep.subr.bf16.mxu1 %v1873_v0  ;;  %1498 = vmatprep.subr.bf16.mxu0 %v1873_v0  ;;  %s1830_s0 = scalar_lea.vmem %s1379_s26, 128  ;;  %p1835_p1 = scmp.lt.s32.totalorder %s1379_s26, %s1379_s26 }
  0x87   :  { %p1831_p0 = scmp.ne.s32.totalorder %s1379_s26, %s1830_s0  ;;  %p1836_p2 = scmp.lt.s32.totalorder %s1830_s0, %s1830_s0 }
  0x88   :  { %1495 = vmatmul.mubr.msk.bf16.vlgmr.msra.gmra.mrb[0].mxu1 %vm165_vm1, %v138_v8  ;;  %1487 = vmatmul.mubr.msk.bf16.vlgmr.msra.gmra.mrb[0].mxu0 %vm165_vm1, %v135_v10 }
  0x89   :  { %1508 = vmatprep.mubr.msk.bf16.mxu1 %vm1874_vm0, %v1873_v0  ;;  %1502 = vmatprep.mubr.msk.bf16.mxu0 %vm1874_vm0, %v1873_v0  ;;  %p1837_p3 = por %p1836_p2, %p1835_p1 }
  0x8a   :  { %1499 = vmatpush3.bf16.msra.mxu0 %v1638_v23 }
  0x8b   :  { %1500 = vmatprep.subr.bf16.mxu0 %v1873_v0  ;;  %p1838_p4 = pnand %p1837_p3, %p1831_p0 }
  0x8e   :  { %1501 = vmatpush3.bf16.msra.mxu0 %v1639_v28 }
  0x8f   :  { %1512 = vmatprep.subr.bf16.mxu0 %v1873_v0 }
  0x91   :  { %1503 = vmatmul.mubr.msk.bf16.vlgmr.msra.gmra.mrb[4].mxu0 %vm165_vm1, %v141_v32 }
  0x92   :  { %1514 = vmatprep.mubr.msk.bf16.mxu0 %vm1874_vm0, %v1873_v0 }
 0x15b   :  { %v271_v13 = vpop.f32.mrb[0].mxu1  ;;  %v203_v15 = vpop.f32.mrb[0].mxu0 }
 0x15c   :  { %v1496_v14 = vpop.f32.mrb[1].mxu1  ;;  %v204_v17 = vadd.f32 %v1393_v11, %v203_v15  ;;  %v1488_v18 = vpop.f32.mrb[1].mxu0  ;;  %v272_v19 = vadd.f32 %v1397_v12, %v271_v13 }
 0x15d   :  { %v274_v16 = vpop.f32.mrb[2].mxu1  ;;  %v206_v22 = vpop.f32.mrb[2].mxu0 }
 0x15e   :  { %v275_v20 = vadd.f32 %v1397_v12, %v274_v16  ;;  %v1497_v21 = vpop.f32.mrb[3].mxu1  ;;  %v207_v24 = vadd.f32 %v1393_v11, %v206_v22  ;;  %v1489_v25 = vpop.f32.mrb[3].mxu0 }
 0x160   :  { %v278_v26 = vpack.c.bf16 %v275_v20, %v272_v19  ;;  %v210_v27 = vpack.c.bf16 %v207_v24, %v204_v17 }
 0x162   :  { %579 = vrot.lane.b32.xlu1 %v278_v26, %s1875_s4  ;;  %461 = vrot.lane.b32.xlu0 %v278_v26, %s1876_s6  ;;  %v352_v29 = vsel %vm347_vm2, %v278_v26, 0  ;;  %v812_v33 = vrot.slane %v278_v26, 4  ;;  %v811_v34 = vrot.slane %v210_v27, 4 }
 0x163   :  { %1507 = vmatpush3.bf16.xpose.msra.mxu1 %v352_v29 }
 0x164   :  { %1518 = vmatprep.subr.bf16.mxu1 %v1873_v0  ;;  %v817_v44 = vsel %vm347_vm2, %v812_v33, 0  ;;  %v339_v55 = vpop.f32.mrb[4].mxu0 }
 0x165   :  { %v340_v56 = vadd.f32 %v1401_v54, %v339_v55  ;;  %v1504_v57 = vpop.f32.mrb[5].mxu0 }
 0x166   :  { %577 = vrot.lane.b32.xlu1 %v210_v27, %s1875_s4  ;;  %458 = vrot.lane.b32.xlu0 %v210_v27, %s1876_s6  ;;  %v342_v58 = vpop.f32.mrb[6].mxu0 }
 0x167   :  { %v343_v59 = vadd.f32 %v1401_v54, %v342_v58  ;;  %v1505_v60 = vpop.f32.mrb[7].mxu0 }
 0x169   :  { %v346_v1 = vpack.c.bf16 %v343_v59, %v340_v56 }
 0x16a   :  { %694 = vrot.lane.b32.xlu1 %v210_v27, %s1877_s7  ;;  %696 = vrot.lane.b32.xlu0 %v278_v26, %s1877_s7 }
 0x16b   :  { %1509 = vmatmul.mubr.msk.bf16.vlgmr.msra.gmra.mrb[4].mxu1 %vm347_vm2, %v210_v27  ;;  %v410_v4 = vsel %vm408_vm4, %v346_v1, 0 }
 0x16c   :  { %1520 = vmatprep.mubr.msk.bf16.mxu1 %vm1874_vm0, %v1873_v0  ;;  %1513 = vmatpush3.bf16.msra.mxu0 %v410_v4 }
 0x16d   :  { %1524 = vmatprep.subr.bf16.mxu0 %v1873_v0 }
 0x16e   :  { %926 = vrot.lane.b32.xlu0 %v812_v33, %s1876_s6  ;;  %924 = vrot.lane.b32.xlu1 %v811_v34, %s1876_s6 }
 0x172   :  { %1044 = vrot.lane.b32.xlu0 %v812_v33, %s1875_s4  ;;  %1042 = vrot.lane.b32.xlu1 %v811_v34, %s1875_s4 }
 0x176   :  { %1162 = vrot.lane.b32.xlu0 %v812_v33, %s1877_s7  ;;  %1160 = vrot.lane.b32.xlu1 %v811_v34, %s1877_s7 }
 0x1d4   :  { %v462_v35 = vpop.permute.xlu0 %461  ;;  %v580_v37 = vpop.permute.xlu1 %579 }
 0x1d5   :  { %v467_v36 = vsel %vm347_vm2, %v462_v35, 0  ;;  %v585_v39 = vsel %vm347_vm2, %v580_v37, 0 }
 0x1d6   :  { %1519 = vmatpush3.bf16.xpose.msra.mxu1 %v467_v36 }
 0x1d7   :  { %1530 = vmatprep.subr.bf16.mxu1 %v1873_v0 }
 0x1d8   :  { %v459_v38 = vpop.permute.xlu0 %458  ;;  %v578_v41 = vpop.permute.xlu1 %577 }
 0x1dc   :  { %v697_v40 = vpop.permute.xlu0 %696  ;;  %v695_v43 = vpop.permute.xlu1 %694 }
 0x1dd   :  { %1521 = vmatmul.mubr.msk.bf16.vlgmr.msra.gmra.mrb[8].mxu1 %vm347_vm2, %v459_v38  ;;  %v702_v42 = vsel %vm347_vm2, %v697_v40, 0 }
 0x1de   :  { %1531 = vmatpush3.bf16.xpose.msra.mxu1 %v585_v39  ;;  %1532 = vmatprep.mubr.msk.bf16.mxu1 %vm1874_vm0, %v1873_v0 }
 0x1df   :  { %1542 = vmatprep.subr.bf16.mxu1 %v1873_v0 }
 0x1e0   :  { %v927_v45 = vpop.permute.xlu0 %926  ;;  %v925_v48 = vpop.permute.xlu1 %924 }
 0x1e1   :  { %v932_v46 = vsel %vm347_vm2, %v927_v45, 0  ;;  %v869_v45 = vrot.slane %v346_v1, 4 }
 0x1e4   :  { %v1045_v47 = vpop.permute.xlu0 %1044  ;;  %v1043_v51 = vpop.permute.xlu1 %1042 }
 0x1e5   :  { %1533 = vmatmul.mubr.msk.bf16.vlgmr.msra.gmra.mrb[12].mxu1 %vm347_vm2, %v578_v41  ;;  %v1050_v49 = vsel %vm347_vm2, %v1045_v47, 0 }
 0x1e6   :  { %1543 = vmatpush3.bf16.xpose.msra.mxu1 %v702_v42  ;;  %1544 = vmatprep.mubr.msk.bf16.mxu1 %vm1874_vm0, %v1873_v0 }
 0x1e7   :  { %1554 = vmatprep.subr.bf16.mxu1 %v1873_v0 }
 0x1e8   :  { %v1163_v50 = vpop.permute.xlu0 %1162  ;;  %v1161_v53 = vpop.permute.xlu1 %1160 }
 0x1e9   :  { %v1168_v52 = vsel %vm347_vm2, %v1163_v50, 0 }
 0x1ed   :  { %1545 = vmatmul.mubr.msk.bf16.vlgmr.msra.gmra.mrb[16].mxu1 %vm347_vm2, %v695_v43 }
 0x1ee   :  { %1555 = vmatpush3.bf16.xpose.msra.mxu1 %v817_v44  ;;  %1556 = vmatprep.mubr.msk.bf16.mxu1 %vm1874_vm0, %v1873_v0 }
 0x1ef   :  { %1566 = vmatprep.subr.bf16.mxu1 %v1873_v0 }
 0x1f5   :  { %1557 = vmatmul.mubr.msk.bf16.vlgmr.msra.gmra.mrb[20].mxu1 %vm347_vm2, %v811_v34 }
 0x1f6   :  { %1567 = vmatpush3.bf16.xpose.msra.mxu1 %v932_v46  ;;  %1568 = vmatprep.mubr.msk.bf16.mxu1 %vm1874_vm0, %v1873_v0 }
 0x1f7   :  { %1578 = vmatprep.subr.bf16.mxu1 %v1873_v0 }
 0x1fd   :  { %1569 = vmatmul.mubr.msk.bf16.vlgmr.msra.gmra.mrb[24].mxu1 %vm347_vm2, %v925_v48 }
 0x1fe   :  { %1579 = vmatpush3.bf16.xpose.msra.mxu1 %v1050_v49  ;;  %1580 = vmatprep.mubr.msk.bf16.mxu1 %vm1874_vm0, %v1873_v0 }
 0x1ff   :  { %1590 = vmatprep.subr.bf16.mxu1 %v1873_v0 }
 0x205   :  { %1581 = vmatmul.mubr.msk.bf16.vlgmr.msra.gmra.mrb[28].mxu1 %vm347_vm2, %v1043_v51 }
 0x206   :  { %1591 = vmatpush3.bf16.xpose.msra.mxu1 %v1168_v52  ;;  %1592 = vmatprep.mubr.msk.bf16.mxu1 %vm1874_vm0, %v1873_v0 }
 0x207   :  { %1602 = vmatprep.subr.bf16.mxu1 %v1873_v0 }
 0x20d   :  { %1593 = vmatmul.mubr.msk.bf16.vlgmr.msra.gmra.mrb[32].mxu1 %vm347_vm2, %v1161_v53 }
 0x20e   :  { %1610 = vmatprep.mubr.msk.bf16.mxu1 %vm1874_vm0, %v1873_v0 }
 0x23e   :  { %v388_v61 = vpop.f32.mrb[4].mxu1 }
 0x23f   :  { %v1510_v62 = vpop.f32.mrb[5].mxu1  ;;  %v395_v63 = vsel %vm394_vm3, %v388_v61, -inf }
 0x240   :  { %396 = vmax.xlane.f32.xlu0 %v395_v63  ;;  %v391_v2 = vpop.f32.mrb[6].mxu1 }
 0x241   :  { %v1511_v3 = vpop.f32.mrb[7].mxu1 }
 0x2b0   :  { %v503_v5 = vpop.f32.mrb[8].mxu1 }
 0x2b1   :  { %v1522_v6 = vpop.f32.mrb[9].mxu1  ;;  %v509_v7 = vsel %vm394_vm3, %v503_v5, -inf }
 0x2b2   :  { %510 = vmax.xlane.f32.xlu1 %v509_v7  ;;  %v506_v8 = vpop.f32.mrb[10].mxu1 }
 0x2b3   :  { %v1523_v9 = vpop.f32.mrb[11].mxu1 }
 0x2b8   :  { %v621_v10 = vpop.f32.mrb[12].mxu1 }
 0x2b9   :  { %v1534_v11 = vpop.f32.mrb[13].mxu1  ;;  %v627_v12 = vsel %vm394_vm3, %v621_v10, -inf }
 0x2ba   :  { %628 = vmax.xlane.f32.xlu0 %v627_v12  ;;  %v624_v13 = vpop.f32.mrb[14].mxu1 }
 0x2bb   :  { %v1535_v14 = vpop.f32.mrb[15].mxu1 }
 0x2c0   :  { %v738_v15 = vpop.f32.mrb[16].mxu1 }
 0x2c1   :  { %v1546_v16 = vpop.f32.mrb[17].mxu1  ;;  %v744_v17 = vsel %vm394_vm3, %v738_v15, -inf }
 0x2c2   :  { %745 = vmax.xlane.f32.xlu0 %v744_v17  ;;  %v741_v18 = vpop.f32.mrb[18].mxu1 }
 0x2c3   :  { %v1547_v19 = vpop.f32.mrb[19].mxu1  ;;  %637 = vrot.lane.b32.xlu1 %v346_v1, %s1875_s4 }
 0x2c7   :  { %754 = vrot.lane.b32.xlu1 %v346_v1, %s1877_s7 }
 0x2c8   :  { %v2152_v20 = vpop.f32.mrb[20].mxu1 }
 0x2c9   :  { %v1558_v21 = vpop.f32.mrb[21].mxu1  ;;  %v859_v41 = vsel %vm394_vm3, %v2152_v20, -inf }
 0x2ca   :  { %v856_v22 = vpop.f32.mrb[22].mxu1 }
 0x2cb   :  { %v1559_v23 = vpop.f32.mrb[23].mxu1 }
 0x2cd   :  { %v397_v24 = vpop.xlane.xlu0 %396 }
 0x2ce   :  { %v398_v25 = vsub.f32 %v388_v61, %v397_v24 }
 0x2d0   :  { %v399_v26 = vmul.f32 1.442695, %v398_v25  ;;  %v2154_v27 = vpop.f32.mrb[24].mxu1 }
 0x2d1   :  { %v1570_v28 = vpop.f32.mrb[25].mxu1  ;;  %v974_v42 = vsel %vm394_vm3, %v2154_v27, -inf }
 0x2d2   :  { %1644 = vpow2.f32 %v399_v26  ;;  %v971_v29 = vpop.f32.mrb[26].mxu1 }
 0x2d3   :  { %v1571_v30 = vpop.f32.mrb[27].mxu1 }
 0x2d8   :  { %v2156_v31 = vpop.f32.mrb[28].mxu1  ;;  %520 = vrot.lane.b32.xlu0 %v346_v1, %s1876_s6 }
 0x2d9   :  { %v1582_v32 = vpop.f32.mrb[29].mxu1  ;;  %v1092_v44 = vsel %vm394_vm3, %v2156_v31, -inf }
 0x2da   :  { %v1089_v33 = vpop.f32.mrb[30].mxu1 }
 0x2db   :  { %v1583_v34 = vpop.f32.mrb[31].mxu1 }
 0x2dc   :  { %v2159_v35 = vpop.eup %1644 }
 0x2dd   :  { %v404_v36 = vpack.c.bf16 %v2159_v35, %v2159_v35  ;;  %v401_v34 = vsel %vm394_vm3, %v2159_v35, 0.0 }
 0x2df   :  { %1515 = vmatmul.mubr.msk.bf16.vlgmr.msra.gmra.mrb[8].mxu0 %vm394_vm3, %v404_v36 }
 0x2e0   :  { %v2164_v37 = vpop.f32.mrb[32].mxu1  ;;  %1526 = vmatprep.mubr.msk.bf16.mxu0 %vm1874_vm0, %v1873_v0 }
 0x2e1   :  { %v1594_v38 = vpop.f32.mrb[33].mxu1  ;;  %v1210_v43 = vsel %vm394_vm3, %v2164_v37, -inf }
 0x2e2   :  { %v1207_v39 = vpop.f32.mrb[34].mxu1 }
 0x2e3   :  { %v1595_v40 = vpop.f32.mrb[35].mxu1 }
 0x2eb   :  { %860 = vmax.xlane.f32.xlu1 %v859_v41 }
 0x2ef   :  { %975 = vmax.xlane.f32.xlu1 %v974_v42 }
 0x2f3   :  { %1211 = vmax.xlane.f32.xlu1 %v1210_v43 }
 0x2f7   :  { %1093 = vmax.xlane.f32.xlu0 %v1092_v44 }
 0x304   :  { %1102 = vrot.lane.b32.xlu1 %v869_v45, %s1875_s4 }
 0x30d   :  { %984 = vrot.lane.b32.xlu0 %v869_v45, %s1876_s6 }
 0x311   :  { %1220 = vrot.lane.b32.xlu0 %v869_v45, %s1877_s7 }
 0x33f   :  { %v511_v46 = vpop.xlane.xlu1 %510 }
 0x340   :  { %v512_v47 = vsub.f32 %v503_v5, %v511_v46  ;;  %v874_v5 = vsel %vm408_vm4, %v869_v45, 0 }
 0x342   :  { %v513_v48 = vmul.f32 1.442695, %v512_v47 }
 0x343   :  { %v638_v58 = vpop.permute.xlu1 %637 }
 0x344   :  { %1646 = vpow2.f32 %v513_v48  ;;  %v643_v61 = vsel %vm408_vm4, %v638_v58, 0 }
 0x347   :  { %v629_v49 = vpop.xlane.xlu0 %628  ;;  %v755_v63 = vpop.permute.xlu1 %754 }
 0x348   :  { %v630_v50 = vsub.f32 %v621_v10, %v629_v49  ;;  %v760_v2 = vsel %vm408_vm4, %v755_v63, 0 }
 0x34a   :  { %v631_v51 = vmul.f32 1.442695, %v630_v50 }
 0x34c   :  { %1648 = vpow2.f32 %v631_v51 }
 0x34e   :  { %v1647_v52 = vpop.eup %1646 }
 0x34f   :  { %v746_v53 = vpop.xlane.xlu0 %745  ;;  %v515_v54 = vsel %vm394_vm3, %v1647_v52, 0.0  ;;  %v518_v60 = vpack.c.bf16 %v1647_v52, %v1647_v52 }
 0x350   :  { %516 = vadd.xlane.f32.xlu0 %v515_v54  ;;  %v747_v55 = vsub.f32 %v738_v15, %v746_v53 }
 0x352   :  { %v748_v59 = vmul.f32 1.442695, %v747_v55 }
 0x353   :  { %v521_v56 = vpop.permute.xlu0 %520 }
 0x354   :  { %v526_v57 = vsel %vm408_vm4, %v521_v56, 0  ;;  %1650 = vpow2.f32 %v748_v59 }
 0x355   :  { %1525 = vmatpush3.bf16.msra.mxu0 %v526_v57 }
 0x356   :  { %1536 = vmatprep.subr.bf16.mxu0 %v1873_v0  ;;  %v1649_v62 = vpop.eup %1648 }
 0x357   :  { %v636_v1 = vpack.c.bf16 %v1649_v62, %v1649_v62  ;;  %v633_v33 = vsel %vm394_vm3, %v1649_v62, 0.0 }
 0x358   :  { %1527 = vmatmul.mubr.msk.bf16.vlgmr.msra.gmra.mrb[12].mxu0 %vm394_vm3, %v518_v60 }
 0x359   :  { %1537 = vmatpush3.bf16.msra.mxu0 %v643_v61  ;;  %1538 = vmatprep.mubr.msk.bf16.mxu0 %vm1874_vm0, %v1873_v0 }
 0x35a   :  { %1548 = vmatprep.subr.bf16.mxu0 %v1873_v0 }
 0x35e   :  { %v1651_v3 = vpop.eup %1650 }
 0x35f   :  { %v753_v4 = vpack.c.bf16 %v1651_v3, %v1651_v3 }
 0x360   :  { %1539 = vmatmul.mubr.msk.bf16.vlgmr.msra.gmra.mrb[16].mxu0 %vm394_vm3, %v636_v1 }
 0x361   :  { %1549 = vmatpush3.bf16.msra.mxu0 %v760_v2  ;;  %1550 = vmatprep.mubr.msk.bf16.mxu0 %vm1874_vm0, %v1873_v0 }
 0x362   :  { %1560 = vmatprep.subr.bf16.mxu0 %v1873_v0 }
 0x368   :  { %1551 = vmatmul.mubr.msk.bf16.vlgmr.msra.gmra.mrb[20].mxu0 %vm394_vm3, %v753_v4 }
 0x369   :  { %1561 = vmatpush3.bf16.msra.mxu0 %v874_v5  ;;  %1562 = vmatprep.mubr.msk.bf16.mxu0 %vm1874_vm0, %v1873_v0 }
 0x36a   :  { %1572 = vmatprep.subr.bf16.mxu0 %v1873_v0 }
 0x378   :  { %v861_v6 = vpop.xlane.xlu1 %860 }
 0x379   :  { %v862_v7 = vsub.f32 %v2152_v20, %v861_v6 }
 0x37b   :  { %v863_v8 = vmul.f32 1.442695, %v862_v7 }
 0x37c   :  { %v976_v9 = vpop.xlane.xlu1 %975 }
 0x37d   :  { %1652 = vpow2.f32 %v863_v8  ;;  %v977_v10 = vsub.f32 %v2154_v27, %v976_v9 }
 0x37f   :  { %v978_v11 = vmul.f32 1.442695, %v977_v10 }
 0x380   :  { %v1212_v12 = vpop.xlane.xlu1 %1211 }
 0x381   :  { %1654 = vpow2.f32 %v978_v11  ;;  %v1213_v13 = vsub.f32 %v2164_v37, %v1212_v12 }
 0x383   :  { %v1214_v14 = vmul.f32 1.442695, %v1213_v13 }
 0x384   :  { %v1094_v15 = vpop.xlane.xlu0 %1093  ;;  %v1103_v25 = vpop.permute.xlu1 %1102 }
 0x385   :  { %1656 = vpow2.f32 %v1214_v14  ;;  %v1095_v16 = vsub.f32 %v2156_v31, %v1094_v15  ;;  %v1108_v28 = vsel %vm408_vm4, %v1103_v25, 0  ;;  %v750_v31 = vsel %vm394_vm3, %v1651_v3, 0.0 }
 0x387   :  { %v1653_v17 = vpop.eup %1652  ;;  %v1096_v18 = vmul.f32 1.442695, %v1095_v16 }
 0x388   :  { %v985_v19 = vpop.permute.xlu0 %984  ;;  %v868_v21 = vpack.c.bf16 %v1653_v17, %v1653_v17  ;;  %v865_v38 = vsel %vm394_vm3, %v1653_v17, 0.0 }
 0x389   :  { %1658 = vpow2.f32 %v1096_v18  ;;  %v990_v20 = vsel %vm408_vm4, %v985_v19, 0 }
 0x38a   :  { %1563 = vmatmul.mubr.msk.bf16.vlgmr.msra.gmra.mrb[24].mxu0 %vm394_vm3, %v868_v21 }
 0x38b   :  { %v1655_v22 = vpop.eup %1654  ;;  %1573 = vmatpush3.bf16.msra.mxu0 %v990_v20  ;;  %1574 = vmatprep.mubr.msk.bf16.mxu0 %vm1874_vm0, %v1873_v0 }
 0x38c   :  { %v980_v23 = vsel %vm394_vm3, %v1655_v22, 0.0  ;;  %1584 = vmatprep.subr.bf16.mxu0 %v1873_v0  ;;  %v983_v27 = vpack.c.bf16 %v1655_v22, %v1655_v22  ;;  %v1221_v32 = vpop.permute.xlu0 %1220  ;;  %v1640_v22 = vld [vmem:[%s2273_s9] sm:$0xff]  }
 0x38d   :  { %981 = vadd.xlane.f32.xlu0 %v980_v23  ;;  %v1226_v37 = vsel %vm408_vm4, %v1221_v32, 0  ;;  %1603 = vmatpush3.bf16.msra.mxu1 %v1640_v22 }
 0x38e   :  { %1604 = vmatprep.subr.bf16.mxu1 %v1873_v0 }
 0x38f   :  { %v1657_v24 = vpop.eup %1656 }
 0x390   :  { %v1216_v26 = vsel %vm394_vm3, %v1657_v24, 0.0  ;;  %v1219_v39 = vpack.c.bf16 %v1657_v24, %v1657_v24 }
 0x391   :  { %1217 = vadd.xlane.f32.xlu0 %v1216_v26  ;;  %v1641_v26 = vld [vmem:[%s2273_s9 + $0x8] sm:$0xff]  }
 0x392   :  { %1575 = vmatmul.mubr.msk.bf16.vlgmr.msra.gmra.mrb[28].mxu0 %vm394_vm3, %v983_v27  ;;  %1605 = vmatpush3.bf16.msra.mxu1 %v1641_v26 }
 0x393   :  { %v1659_v29 = vpop.eup %1658  ;;  %1585 = vmatpush3.bf16.msra.mxu0 %v1108_v28  ;;  %1586 = vmatprep.mubr.msk.bf16.mxu0 %vm1874_vm0, %v1873_v0 }
 0x394   :  { %v1098_v30 = vsel %vm394_vm3, %v1659_v29, 0.0  ;;  %1596 = vmatprep.subr.bf16.mxu0 %v1873_v0  ;;  %v1101_v36 = vpack.c.bf16 %v1659_v29, %v1659_v29  ;;  %1606 = vmatprep.subr.bf16.mxu1 %v1873_v0 }
 0x395   :  { %1099 = vadd.xlane.f32.xlu1 %v1098_v30  ;;  %751 = vadd.xlane.f32.xlu0 %v750_v31 }
 0x399   :  { %634 = vadd.xlane.f32.xlu1 %v633_v33  ;;  %402 = vadd.xlane.f32.xlu0 %v401_v34 }
 0x39a   :  { %1587 = vmatmul.mubr.msk.bf16.vlgmr.msra.gmra.mrb[32].mxu0 %vm394_vm3, %v1101_v36  ;;  %v1642_v36 = vld [vmem:[%s2273_s9 + $0x10] sm:$0xff]  }
 0x39b   :  { %1597 = vmatpush3.bf16.msra.mxu0 %v1226_v37  ;;  %1598 = vmatprep.mubr.msk.bf16.mxu0 %vm1874_vm0, %v1873_v0 }
 0x39c   :  { %1607 = vmatpush3.bf16.msra.mxu1 %v1642_v36 }
 0x39d   :  { %866 = vadd.xlane.f32.xlu1 %v865_v38  ;;  %1608 = vmatprep.subr.bf16.mxu1 %v1873_v0 }
 0x3a2   :  { %1599 = vmatmul.mubr.msk.bf16.vlgmr.msra.gmra.mrb[36].mxu0 %vm394_vm3, %v1219_v39  ;;  %v1643_v39 = vld [vmem:[%s2273_s9 + $0x18] sm:$0xff]  }
 0x3a3   :  { %1609 = vmatpush3.bf16.msra.mxu1 %v1643_v39 }
 0x3b2   :  { %v446_v40 = vpop.f32.mrb[8].mxu0 }
 0x3b3   :  { %v1516_v41 = vpop.f32.mrb[9].mxu0 }
 0x3b4   :  { %v449_v35 = vpop.f32.mrb[10].mxu0 }
 0x3b5   :  { %v1517_v42 = vpop.f32.mrb[11].mxu0 }
 0x3dd   :  { %v517_v43 = vpop.xlane.xlu0 %516 }
 0x3de   :  { %1660 = vrcp.f32 %v517_v43 }
 0x3e8   :  { %v1661_v50 = vpop.eup %1660 }
 0x41a   :  { %v982_v44 = vpop.xlane.xlu0 %981 }
 0x41e   :  { %v2224_v45 = vpop.xlane.xlu0 %1217 }
 0x422   :  { %v1100_v46 = vpop.xlane.xlu1 %1099  ;;  %v752_v47 = vpop.xlane.xlu0 %751 }
 0x426   :  { %v635_v48 = vpop.xlane.xlu1 %634  ;;  %v403_v49 = vpop.xlane.xlu0 %402 }
 0x427   :  { %1662 = vrcp.f32 %v403_v49 }
 0x428   :  { %1664 = vrcp.f32 %v635_v48 }
 0x42a   :  { %v867_v8 = vpop.xlane.xlu1 %866 }
 0x42b   :  { %v562_v51 = vpop.f32.mrb[12].mxu0  ;;  %1666 = vrcp.f32 %v867_v8 }
 0x42c   :  { %v569_v52 = vmul.f32 %v1661_v50, %v562_v51  ;;  %v1528_v53 = vpop.f32.mrb[13].mxu0  ;;  %1668 = vrcp.f32 %v982_v44 }
 0x42d   :  { %v565_v54 = vpop.f32.mrb[14].mxu0  ;;  %1670 = vrcp.f32 %v752_v47 }
 0x42e   :  { %v570_v55 = vpack.c.bf16 %v569_v52, %v569_v52  ;;  %v1529_v56 = vpop.f32.mrb[15].mxu0  ;;  %1672 = vrcp.f32 %v1100_v46  ;;  %v1421_v54 = vld [vmem:[%s2274_s10] ss:$0 sm:$0xff] }
 0x42f   :  { %1674 = vrcp.f32 %v2224_v45 }
 0x430   :  { %572 = vrot.lane.b32.xlu1 %v570_v55, %s1878_s27 }
 0x431   :  { %v1663_v57 = vpop.eup %1662 }
 0x432   :  { %v1665_v58 = vpop.eup %1664  ;;  %v453_v59 = vmul.f32 %v1663_v57, %v446_v40 }
 0x433   :  { %v679_v60 = vpop.f32.mrb[16].mxu0 }
 0x434   :  { %v686_v61 = vmul.f32 %v1665_v58, %v679_v60  ;;  %v1540_v62 = vpop.f32.mrb[17].mxu0  ;;  %v454_v1 = vpack.c.bf16 %v453_v59, %v453_v59 }
 0x435   :  { %v682_v63 = vpop.f32.mrb[18].mxu0  ;;  %v1667_v9 = vpop.eup %1666 }
 0x436   :  { %v687_v2 = vpack.c.bf16 %v686_v61, %v686_v61  ;;  %v1541_v3 = vpop.f32.mrb[19].mxu0  ;;  %456 = vst.msk [vmem:[#allocation2] sm:$0xf] %vm455_vm5, %v454_v1  ;;  %v1669_v17 = vpop.eup %1668 }
 0x437   :  { %v1671_v25 = vpop.eup %1670 }
 0x438   :  { %689 = vrot.lane.b32.xlu1 %v687_v2, %s1879_s16  ;;  %v1673_v29 = vpop.eup %1672 }
 0x439   :  { %v1675_v41 = vpop.eup %1674 }
 0x43b   :  { %v796_v4 = vpop.f32.mrb[20].mxu0 }
 0x43c   :  { %v1552_v5 = vpop.f32.mrb[21].mxu0  ;;  %v803_v27 = vmul.f32 %v1671_v25, %v796_v4 }
 0x43d   :  { %v799_v6 = vpop.f32.mrb[22].mxu0 }
 0x43e   :  { %v1553_v7 = vpop.f32.mrb[23].mxu0  ;;  %v804_v31 = vpack.c.bf16 %v803_v27, %v803_v27 }
 0x45d   :  { %v910_v10 = vpop.f32.mrb[24].mxu0 }
 0x45e   :  { %v917_v11 = vmul.f32 %v1667_v9, %v910_v10  ;;  %v1564_v12 = vpop.f32.mrb[25].mxu0 }
 0x45f   :  { %v913_v13 = vpop.f32.mrb[26].mxu0 }
 0x460   :  { %v918_v14 = vpack.c.bf16 %v917_v11, %v917_v11  ;;  %v1565_v15 = vpop.f32.mrb[27].mxu0 }
 0x462   :  { %v920_v16 = vrot.slane %v918_v14, 4 }
 0x464   :  { %923 = vst.msk [vmem:[#allocation2] sm:$0xf0] %vm922_vm6, %v920_v16 }
 0x465   :  { %v1026_v18 = vpop.f32.mrb[28].mxu0 }
 0x466   :  { %v1033_v19 = vmul.f32 %v1669_v17, %v1026_v18  ;;  %v1576_v21 = vpop.f32.mrb[29].mxu0 }
 0x467   :  { %v1029_v20 = vpop.f32.mrb[30].mxu0 }
 0x468   :  { %v1034_v23 = vpack.c.bf16 %v1033_v19, %v1033_v19  ;;  %v1577_v24 = vpop.f32.mrb[31].mxu0 }
 0x46a   :  { %v1036_v28 = vrot.slane %v1034_v23, 4 }
 0x46c   :  { %1037 = vrot.lane.b32.xlu0 %v1036_v28, %s1878_s27 }
 0x46d   :  { %v1144_v30 = vpop.f32.mrb[32].mxu0 }
 0x46e   :  { %v1151_v32 = vmul.f32 %v1673_v29, %v1144_v30  ;;  %v1588_v33 = vpop.f32.mrb[33].mxu0 }
 0x46f   :  { %v1147_v34 = vpop.f32.mrb[34].mxu0 }
 0x470   :  { %v1152_v37 = vpack.c.bf16 %v1151_v32, %v1151_v32  ;;  %806 = vrot.lane.b32.xlu0 %v804_v31, %s1880_s20  ;;  %v1589_v38 = vpop.f32.mrb[35].mxu0 }
 0x472   :  { %v1154_v40 = vrot.slane %v1152_v37, 4 }
 0x474   :  { %1155 = vrot.lane.b32.xlu1 %v1154_v40, %s1879_s16 }
 0x475   :  { %v1262_v35 = vpop.f32.mrb[36].mxu0 }
 0x476   :  { %v1269_v42 = vmul.f32 %v1675_v41, %v1262_v35  ;;  %v1600_v43 = vpop.f32.mrb[37].mxu0 }
 0x477   :  { %v1265_v44 = vpop.f32.mrb[38].mxu0 }
 0x478   :  { %v1270_v45 = vpack.c.bf16 %v1269_v42, %v1269_v42  ;;  %v1601_v46 = vpop.f32.mrb[39].mxu0 }
 0x47a   :  { %v1272_v47 = vrot.slane %v1270_v45, 4 }
 0x47c   :  { %1273 = vrot.lane.b32.xlu1 %v1272_v47, %s1880_s20 }
 0x4a2   :  { %v573_v48 = vpop.permute.xlu1 %572 }
 0x4a3   :  { %576 = vst.msk [vmem:[#allocation2] sm:$0xf] %vm575_vm7, %v573_v48 }
 0x4aa   :  { %v690_v49 = vpop.permute.xlu1 %689 }
 0x4ab   :  { %693 = vst.msk [vmem:[#allocation2] sm:$0xf] %vm692_vm8, %v690_v49 }
 0x4de   :  { %v1038_v0 = vpop.permute.xlu0 %1037 }
 0x4df   :  { %1041 = vst.msk [vmem:[#allocation2] sm:$0xf0] %vm1040_vm9, %v1038_v0 }
 0x4e2   :  { %v807_v50 = vpop.permute.xlu0 %806 }
 0x4e3   :  { %810 = vst.msk [vmem:[#allocation2] sm:$0xf] %vm809_vm10, %v807_v50 }
 0x4e6   :  { %v1156_v51 = vpop.permute.xlu1 %1155 }
 0x4e7   :  { %1159 = vst.msk [vmem:[#allocation2] sm:$0xf0] %vm1158_vm11, %v1156_v51 }
 0x4ee   :  { %v1274_v52 = vpop.permute.xlu1 %1273 }
 0x4ef   :  { %1277 = vst.msk [vmem:[#allocation2] sm:$0xf0] %vm1276_vm12, %v1274_v52 }
 0x4f6   :  { %v1278_v53 = vld [vmem:[#allocation2] sm:$0xff] }
 0x4f7   :  { %1611 = vmatmul.mubr.msk.bf16.vlgmr.msra.gmra.mrb[36].mxu1 %vm1318_vm13, %v1278_v53 }
 0x5ca   :  { %v1356_v55 = vpop.f32.mrb[36].mxu1 }
 0x5cb   :  { %v1612_v56 = vpop.f32.mrb[37].mxu1  ;;  %v1357_v58 = vadd.f32 %v1421_v54, %v1356_v55 }
 0x5cc   :  { %v1359_v57 = vpop.f32.mrb[38].mxu1 }
 0x5cd   :  { %v1360_v59 = vadd.f32 %v1421_v54, %v1359_v57  ;;  %v1613_v60 = vpop.f32.mrb[39].mxu1 }
 0x5cf   :  { %v1434_v61 = vpack.c.bf16 %v1360_v59, %v1357_v58 }
 0x5d1   :  { %1435 = vst [vmem:[#allocation15] sm:$0xff] %v1434_v61  }
 0x5d2   :  { %1841 = shalt.err (!%p1838_p4)
}
 0x5d3   :  { %s1842_s5 = scalar_lea.hbm %s2275_s11, 128 }
 0x5d4   :  { %p1843_p5 = scmp.ne.s32.totalorder %s2275_s11, %s1842_s5  ;;  %p1846_p6 = scmp.lt.u32.totalorder %s1842_s5, %s2275_s11 }
 0x5d6   :  { %p1848_p7 = pnand %p1846_p6, %p1843_p5 }
 0x5d8   :  { %1851 = shalt.err (!%p1848_p7)
}
 0x5d9   :  { %1384 = dma.vmem_to_hbm [thread:$0]  %s1379_s26, 128, %s2275_s11, [#allocation5], %s1866_s1, %s1866_s1, %s1867_s18  }
 0x5da   :  { %1860 = dma.done.wait [#allocation5], 128  }
 0x5db   :  { %1861 = vsyncadd [#allocation5], 4294967168 }
 0x5dc   :  { %1388 = vsyncpa [#allocation4], 1 }
 0x5dd   :  { %1389 = vsyncpa [#allocation7], 1 }
 0x5de   :  { %1390 = vsyncpa [#allocation10], 1 }
 0x5df   :  { %1391 = vsyncpa [#allocation13], 1 }
 0x5e0   :  { %1392 = vsyncpa [#allocation5], 1 }

</bundles_post_ra>
